<compile_context>
chip_gen: v6e
topology: v6e:2x2x1
jax: 0.10.0
libtpu: 0.0.40
codegen_flags: <defaults>
</compile_context>

<pallas_src>
import math

import jax
import jax.numpy as jnp
import numpy as np
from jax import lax
from jax.experimental import pallas as pl
from jax.experimental.pallas import tpu as pltpu


# ---------------------------------------------------------------------------
# Fused kernel: hoisted input projection + interleaved BiLSTM recurrence
#               + 1x1 conv + folded BatchNorm + ReLU epilogue
# ---------------------------------------------------------------------------
def _flstm_fused_kernel(x_ref, wx_ref, b_ref, whf_ref, whb_ref,
                        wcf_ref, wcb_ref, scale_ref, shift_ref,
                        o_ref, gx_sc, yf_sc, yb_sc):
    """Per grid step (one N-block of size nb):

      x_ref        : (F, nb, C)      input block
      wx_ref       : (C, 8H)         [Wx_fwd | Wx_bwd], gate order i, f, g, o
      b_ref        : (1, 8H)         [b_fwd | b_bwd]  (b_ih + b_hh folded)
      wh{f,b}_ref  : (H, 4H)         recurrent weights
      wc{f,b}_ref  : (H, Cout)       1x1-conv weight split over the 2H axis
      scale/shift  : (1, Cout)       folded eval-mode BatchNorm + conv bias
      o_ref        : (F, nb, Cout)   output block
      gx_sc        : (F, nb, 8H)     hoisted input-projection scratch (VMEM)
      y{f,b}_sc    : (F, nb, H)      per-direction hidden states (VMEM)
    """
    f_len, nb, c_dim = x_ref.shape
    h_dim = whf_ref.shape[0]
    g4 = 4 * h_dim

    # ---- 1) Hoisted input projection: one large MXU matmul for both directions
    x2 = x_ref[...].reshape(f_len * nb, c_dim)
    gx = jnp.dot(x2, wx_ref[...], preferred_element_type=jnp.float32) + b_ref[...]
    gx_sc[...] = gx.reshape(f_len, nb, 2 * g4)

    whf = whf_ref[...]
    whb = whb_ref[...]

    def cell(pre, c_old):
        i = jax.nn.sigmoid(pre[:, 0 * h_dim:1 * h_dim])
        f = jax.nn.sigmoid(pre[:, 1 * h_dim:2 * h_dim])
        g = jnp.tanh(pre[:, 2 * h_dim:3 * h_dim])
        o = jax.nn.sigmoid(pre[:, 3 * h_dim:4 * h_dim])
        c_new = f * c_old + i * g
        h_new = o * jnp.tanh(c_new)
        return h_new, c_new

    # ---- 2) Recurrences: fwd (t = s) and bwd (t = F-1-s) interleaved for ILP.
    # Only a small (nb,H)@(H,4H) matmul + VPU/EUP gate math per step/direction.
    def body(s, carry):
        hf, cf, hb, cb = carry
        tb = f_len - 1 - s
        pre_f = gx_sc[s][:, :g4] + jnp.dot(hf, whf,
                                           preferred_element_type=jnp.float32)
        pre_b = gx_sc[tb][:, g4:] + jnp.dot(hb, whb,
                                            preferred_element_type=jnp.float32)
        hf, cf = cell(pre_f, cf)
        hb, cb = cell(pre_b, cb)
        yf_sc[s] = hf
        yb_sc[tb] = hb
        return hf, cf, hb, cb

    z = jnp.zeros((nb, h_dim), jnp.float32)
    lax.fori_loop(0, f_len, body, (z, z, z, z))

    # ---- 3) Fused 1x1 conv + BN + ReLU epilogue: one big matmul over the block.
    # (w_conv is split over the 2H axis, so no concat of yf/yb is needed.)
    yf = yf_sc[...].reshape(f_len * nb, h_dim)
    yb = yb_sc[...].reshape(f_len * nb, h_dim)
    acc = (jnp.dot(yf, wcf_ref[...], preferred_element_type=jnp.float32)
           + jnp.dot(yb, wcb_ref[...], preferred_element_type=jnp.float32))
    out = jnp.maximum(acc * scale_ref[...] + shift_ref[...], 0.0)
    o_ref[...] = out.reshape(f_len, nb, o_ref.shape[-1])


# ---------------------------------------------------------------------------
# Wrapper
# ---------------------------------------------------------------------------
def _round_up(x, m):
    return ((x + m - 1) // m) * m


def _choose_nb(N, F_dim, C, H, Cout, budget_bytes=20 * 1024 * 1024):
    """Largest N-block (multiple of 8, <= 128) whose per-block VMEM footprint
    (double-buffered x/out blocks + gate & hidden scratch, f32) fits the budget.
    Keeps the pipeline 2-deep across v5e (16 MiB default scoped) / v6e / v7x."""
    nb = min(128, _round_up(N, 8))
    while nb > 8:
        per_block = 4 * F_dim * nb * (2 * C + 2 * Cout + 8 * H + 2 * H)
        if per_block <= budget_bytes:
            break
        nb -= 8
    return max(8, nb)


def _bcast_spec(shape):
    nd = len(shape)
    return pl.BlockSpec(shape, lambda i: (0,) * nd)


def flstm_block_forward(x, params):
    B, C, T, F_dim = x.shape
    H = params["hidden_size"]
    Cout = params["out_channels"]
    N = B * T

    # (B, C, T, F) -> (F, B, T, C) -> time-major (F, N, C), N = B*T
    x_seq = jnp.transpose(x, (3, 0, 2, 1)).reshape(F_dim, N, C).astype(jnp.float32)

    nb = _choose_nb(N, F_dim, C, H, Cout)
    Np = _round_up(N, nb)
    if Np != N:
        # padded rows are independent zero sequences; dropped after the kernel
        x_seq = jnp.pad(x_seq, ((0, 0), (0, Np - N), (0, 0)))

    # fold both directions' input projections into a single (C, 8H) matmul,
    # and split the 1x1 conv weight over the 2H axis (fwd / bwd halves)
    wx_cat = jnp.concatenate([params["wx_f"], params["wx_b"]], axis=1)
    b_cat = jnp.concatenate([params["b_f"], params["b_b"]], axis=1)
    wc_f = params["w_conv"][:H]
    wc_b = params["w_conv"][H:]

    out = pl.pallas_call(
        _flstm_fused_kernel,
        out_shape=jax.ShapeDtypeStruct((F_dim, Np, Cout), jnp.float32),
        grid_spec=pltpu.PrefetchScalarGridSpec(
            num_scalar_prefetch=0,
            grid=(Np // nb,),
            in_specs=[
                pl.BlockSpec((F_dim, nb, C), lambda i: (0, i, 0)),
                _bcast_spec((C, 8 * H)),
                _bcast_spec((1, 8 * H)),
                _bcast_spec((H, 4 * H)),
                _bcast_spec((H, 4 * H)),
                _bcast_spec((H, Cout)),
                _bcast_spec((H, Cout)),
                _bcast_spec((1, Cout)),
                _bcast_spec((1, Cout)),
            ],
            out_specs=pl.BlockSpec((F_dim, nb, Cout), lambda i: (0, i, 0)),
            scratch_shapes=[
                pltpu.VMEM((F_dim, nb, 8 * H), jnp.float32),  # gate pre-acts
                pltpu.VMEM((F_dim, nb, H), jnp.float32),      # fwd hidden
                pltpu.VMEM((F_dim, nb, H), jnp.float32),      # bwd hidden
            ],
        ),
        compiler_params=pltpu.CompilerParams(
            dimension_semantics=("parallel",),      # N-blocks across TensorCores
            vmem_limit_bytes=32 * 1024 * 1024,
        ),
    )(x_seq, wx_cat, b_cat, params["wh_f"], params["wh_b"],
      wc_f, wc_b, params["bn_scale"], params["bn_shift"])

    # (F, Np, Cout) -> drop padding -> (B, Cout, T, F)  (PyTorch NCHW)
    out = out[:, :N].reshape(F_dim, B, T, Cout)
    return jnp.transpose(out, (1, 3, 2, 0))


# ---------------------------------------------------------------------------
# Deterministic parameter init (mirrors shapes in FLSTMBlock.__init__)
# ---------------------------------------------------------------------------
def init_params(key, in_channels, hidden_size, out_channels):
    C, H, Cout = in_channels, hidden_size, out_channels
    k = 1.0 / math.sqrt(H)
    keys = jax.random.split(key, 10)

    def u(kk, shape, bound):
        return jax.random.uniform(kk, shape, jnp.float32, -bound, bound)

    # nn.LSTM params: weight_ih (4H, C), weight_hh (4H, H), biases (4H,)
    # stored transposed for x @ W; b = b_ih + b_hh (PyTorch adds both).
    wx_f = u(keys[0], (C, 4 * H), k)
    wh_f = u(keys[1], (H, 4 * H), k)
    b_f = (u(keys[2], (4 * H,), k) + u(keys[3], (4 * H,), k)).reshape(1, 4 * H)
    wx_b = u(keys[4], (C, 4 * H), k)
    wh_b = u(keys[5], (H, 4 * H), k)
    b_b = (u(keys[6], (4 * H,), k) + u(keys[7], (4 * H,), k)).reshape(1, 4 * H)

    # nn.Conv2d(2H, Cout, kernel_size=1): weight (Cout, 2H, 1, 1) -> (2H, Cout)
    kc = 1.0 / math.sqrt(2 * H)
    w_conv = u(keys[8], (2 * H, Cout), kc)
    b_conv = u(keys[9], (Cout,), kc)

    # nn.BatchNorm2d(Cout) as freshly initialized, applied in eval mode:
    # gamma=1, beta=0, running_mean=0, running_var=1, eps=1e-5.
    # TODO(synk): training-mode BN (batch statistics) not implemented; eval-mode
    # running stats are folded into a per-channel scale/shift with the conv bias.
    eps = 1e-5
    gamma = jnp.ones((Cout,), jnp.float32)
    beta = jnp.zeros((Cout,), jnp.float32)
    rmean = jnp.zeros((Cout,), jnp.float32)
    rvar = jnp.ones((Cout,), jnp.float32)
    scale = gamma / jnp.sqrt(rvar + eps)
    shift = (b_conv - rmean) * scale + beta

    return dict(hidden_size=H, out_channels=Cout,
                wx_f=wx_f, wh_f=wh_f, b_f=b_f,
                wx_b=wx_b, wh_b=wh_b, b_b=b_b,
                w_conv=w_conv,
                bn_scale=scale.reshape(1, Cout),
                bn_shift=shift.reshape(1, Cout))


# ---------------------------------------------------------------------------
# Pure-JAX reference for correctness check
# ---------------------------------------------------------------------------
def reference_forward(x, p):
    B, C, T, F_dim = x.shape
    H = p["hidden_size"]
    x_ = jnp.transpose(x, (0, 2, 3, 1)).reshape(B * T, F_dim, C)

    def run_dir(xs, wx, wh, b, reverse):
        def step(carry, x_t):
            h, c = carry
            g = x_t @ wx + h @ wh + b[0]
            i = jax.nn.sigmoid(g[:, :H])
            f = jax.nn.sigmoid(g[:, H:2 * H])
            gg = jnp.tanh(g[:, 2 * H:3 * H])
            o = jax.nn.sigmoid(g[:, 3 * H:])
            c = f * c + i * gg
            h = o * jnp.tanh(c)
            return (h, c), h

        N = xs.shape[0]
        h0 = jnp.zeros((N, H), jnp.float32)
        c0 = jnp.zeros((N, H), jnp.float32)
        xs_t = jnp.transpose(xs, (1, 0, 2))
        if reverse:
            xs_t = xs_t[::-1]
        _, ys = lax.scan(step, (h0, c0), xs_t)
        if reverse:
            ys = ys[::-1]
        return jnp.transpose(ys, (1, 0, 2))

    yf = run_dir(x_, p["wx_f"], p["wh_f"], p["b_f"], False)
    yb = run_dir(x_, p["wx_b"], p["wh_b"], p["b_b"], True)
    y = jnp.concatenate([yf, yb], axis=-1)
    out = jnp.maximum(y @ p["w_conv"] * p["bn_scale"] + p["bn_shift"], 0.0)
    out = out.reshape(B, T, F_dim, -1)
    return jnp.transpose(out, (0, 3, 1, 2))


if __name__ == "__main__":
    key = jax.random.PRNGKey(0)
    kx, kp = jax.random.split(key)

    # x has shape (B, C, T, F) per the module's forward; H multiple of 32 so
    # 4H / 8H are 128-lane multiples.
    B, C, T, F_dim = 2, 4, 8, 16
    H, Cout = 32, 8

    x = jax.random.normal(kx, (B, C, T, F_dim), jnp.float32)
    params = init_params(kp, C, H, Cout)

    out = flstm_block_forward(x, params)
    out = jax.block_until_ready(out)
    assert out.shape == (B, Cout, T, F_dim)

    ref = reference_forward(x, params)
    np.testing.assert_allclose(np.asarray(out), np.asarray(ref),
                               rtol=1e-4, atol=1e-4)
    print("KERNEL_OK")
</pallas_src>

<mosaic_0001>
module attributes {stable_mosaic.version = 11 : i64} {
  func.func @_flstm_fused_kernel(%arg0: i32, %arg1: memref<16x16x4xf32, #tpu.memory_space<vmem>>, %arg2: memref<4x256xf32, #tpu.memory_space<vmem>>, %arg3: memref<1x256xf32, #tpu.memory_space<vmem>>, %arg4: memref<32x128xf32, #tpu.memory_space<vmem>>, %arg5: memref<32x128xf32, #tpu.memory_space<vmem>>, %arg6: memref<32x8xf32, #tpu.memory_space<vmem>>, %arg7: memref<32x8xf32, #tpu.memory_space<vmem>>, %arg8: memref<1x8xf32, #tpu.memory_space<vmem>>, %arg9: memref<1x8xf32, #tpu.memory_space<vmem>>, %arg10: memref<16x16x8xf32, #tpu.memory_space<vmem>>, %arg11: memref<16x16x256xf32, #tpu.memory_space<vmem>>, %arg12: memref<16x16x32xf32, #tpu.memory_space<vmem>>, %arg13: memref<16x16x32xf32, #tpu.memory_space<vmem>>) attributes {dimension_semantics = [#tpu.dimension_semantics<parallel>], iteration_bounds = array<i64: 1>, scalar_prefetch = 0 : i64, scratch_operands = 3 : i64, tpu.core_type = #tpu.core_type<tc>, window_params = [{transform_indices = @transform_0, window_bounds = array<i64: 16, 16, 4>}, {pipeline_mode = #tpu.pipeline_mode<synchronous>, transform_indices = @transform_1, window_bounds = array<i64: 4, 256>}, {pipeline_mode = #tpu.pipeline_mode<synchronous>, transform_indices = @transform_2, window_bounds = array<i64: 1, 256>}, {pipeline_mode = #tpu.pipeline_mode<synchronous>, transform_indices = @transform_3, window_bounds = array<i64: 32, 128>}, {pipeline_mode = #tpu.pipeline_mode<synchronous>, transform_indices = @transform_4, window_bounds = array<i64: 32, 128>}, {pipeline_mode = #tpu.pipeline_mode<synchronous>, transform_indices = @transform_5, window_bounds = array<i64: 32, 8>}, {pipeline_mode = #tpu.pipeline_mode<synchronous>, transform_indices = @transform_6, window_bounds = array<i64: 32, 8>}, {pipeline_mode = #tpu.pipeline_mode<synchronous>, transform_indices = @transform_7, window_bounds = array<i64: 1, 8>}, {pipeline_mode = #tpu.pipeline_mode<synchronous>, transform_indices = @transform_8, window_bounds = array<i64: 1, 8>}, {transform_indices = @transform_9, window_bounds = array<i64: 16, 16, 8>}]} {
    %c0 = arith.constant 0 : index
    %c0_0 = arith.constant 0 : index
    %c0_1 = arith.constant 0 : index
    %0 = vector.load %arg1[%c0, %c0_0, %c0_1] : memref<16x16x4xf32, #tpu.memory_space<vmem>>, vector<16x16x4xf32>
    %1 = vector.shape_cast %0 : vector<16x16x4xf32> to vector<256x4xf32>
    %c0_2 = arith.constant 0 : index
    %c0_3 = arith.constant 0 : index
    %2 = vector.load %arg2[%c0_2, %c0_3] : memref<4x256xf32, #tpu.memory_space<vmem>>, vector<4x256xf32>
    %cst = arith.constant dense<0.000000e+00> : vector<256x256xf32>
    %3 = tpu.matmul %1, %2, %cst {dimension_numbers = #tpu.dot_dimension_numbers<[1], [0], [0], [1], [0, 0, 1, 1], [], []>} : vector<256x4xf32>, vector<4x256xf32>, vector<256x256xf32> -> vector<256x256xf32>
    %c0_4 = arith.constant 0 : index
    %c0_5 = arith.constant 0 : index
    %4 = vector.load %arg3[%c0_4, %c0_5] : memref<1x256xf32, #tpu.memory_space<vmem>>, vector<1x256xf32>
    %5 = vector.broadcast %4 : vector<1x256xf32> to vector<256x256xf32>
    %6 = arith.addf %3, %5 : vector<256x256xf32>
    %7 = vector.shape_cast %6 : vector<256x256xf32> to vector<16x16x256xf32>
    %c0_6 = arith.constant 0 : index
    %c0_7 = arith.constant 0 : index
    %c0_8 = arith.constant 0 : index
    %8 = vector.load %arg11[%c0_6, %c0_7, %c0_8] : memref<16x16x256xf32, #tpu.memory_space<vmem>>, vector<16x16x256xf32>
    tpu.vector_store %arg11[%c0_6, %c0_7, %c0_8], %7 {strides = array<i32>} : memref<16x16x256xf32, #tpu.memory_space<vmem>>, vector<16x16x256xf32>,
    %c0_9 = arith.constant 0 : index
    %c0_10 = arith.constant 0 : index
    %9 = vector.load %arg4[%c0_9, %c0_10] : memref<32x128xf32, #tpu.memory_space<vmem>>, vector<32x128xf32>
    %c0_11 = arith.constant 0 : index
    %c0_12 = arith.constant 0 : index
    %10 = vector.load %arg5[%c0_11, %c0_12] : memref<32x128xf32, #tpu.memory_space<vmem>>, vector<32x128xf32>
    %cst_13 = arith.constant 0.000000e+00 : f32
    %11 = vector.broadcast %cst_13 : f32 to vector<16x32xf32>
    %c0_i32 = arith.constant 0 : i32
    %c16_i32 = arith.constant 16 : i32
    %12 = arith.addi %c0_i32, %c16_i32 : i32
    %c1_i32 = arith.constant 1 : i32
    %13:4 = scf.for %arg14 = %c0_i32 to %12 step %c1_i32 iter_args(%arg15 = %11, %arg16 = %11, %arg17 = %11, %arg18 = %11) -> (vector<16x32xf32>, vector<16x32xf32>, vector<16x32xf32>, vector<16x32xf32>)  : i32 {
      %c15_i32 = arith.constant 15 : i32
      %33 = arith.subi %c15_i32, %arg14 : i32
      %34 = arith.index_cast %arg14 : i32 to index
      %c0_35 = arith.constant 0 : index
      %c0_36 = arith.constant 0 : index
      %35 = vector.load %arg11[%34, %c0_35, %c0_36] : memref<16x16x256xf32, #tpu.memory_space<vmem>>, vector<1x16x256xf32>
      %36 = vector.shape_cast %35 : vector<1x16x256xf32> to vector<16x256xf32>
      %37 = vector.extract_strided_slice %36 {offsets = [0, 0], sizes = [16, 128], strides = [1, 1]} : vector<16x256xf32> to vector<16x128xf32>
      %cst_37 = arith.constant dense<0.000000e+00> : vector<16x128xf32>
      %38 = tpu.matmul %arg15, %9, %cst_37 {dimension_numbers = #tpu.dot_dimension_numbers<[1], [0], [0], [1], [0, 0, 1, 1], [], []>} : vector<16x32xf32>, vector<32x128xf32>, vector<16x128xf32> -> vector<16x128xf32>
      %39 = arith.addf %37, %38 : vector<16x128xf32>
      %40 = arith.index_cast %33 : i32 to index
      %c0_38 = arith.constant 0 : index
      %c0_39 = arith.constant 0 : index
      %41 = vector.load %arg11[%40, %c0_38, %c0_39] : memref<16x16x256xf32, #tpu.memory_space<vmem>>, vector<1x16x256xf32>
      %42 = vector.shape_cast %41 : vector<1x16x256xf32> to vector<16x256xf32>
      %43 = vector.extract_strided_slice %42 {offsets = [0, 128], sizes = [16, 128], strides = [1, 1]} : vector<16x256xf32> to vector<16x128xf32>
      %cst_40 = arith.constant dense<0.000000e+00> : vector<16x128xf32>
      %44 = tpu.matmul %arg17, %10, %cst_40 {dimension_numbers = #tpu.dot_dimension_numbers<[1], [0], [0], [1], [0, 0, 1, 1], [], []>} : vector<16x32xf32>, vector<32x128xf32>, vector<16x128xf32> -> vector<16x128xf32>
      %45 = arith.addf %43, %44 : vector<16x128xf32>
      %46 = vector.extract_strided_slice %39 {offsets = [0, 0], sizes = [16, 32], strides = [1, 1]} : vector<16x128xf32> to vector<16x32xf32>
      %47 = arith.negf %46 : vector<16x32xf32>
      %48 = math.exp %47 : vector<16x32xf32>
      %cst_41 = arith.constant 1.000000e+00 : f32
      %49 = vector.broadcast %cst_41 : f32 to vector<16x32xf32>
      %50 = arith.addf %49, %48 : vector<16x32xf32>
      %51 = arith.divf %49, %50 : vector<16x32xf32>
      %52 = vector.extract_strided_slice %39 {offsets = [0, 32], sizes = [16, 32], strides = [1, 1]} : vector<16x128xf32> to vector<16x32xf32>
      %53 = arith.negf %52 : vector<16x32xf32>
      %54 = math.exp %53 : vector<16x32xf32>
      %cst_42 = arith.constant 1.000000e+00 : f32
      %55 = vector.broadcast %cst_42 : f32 to vector<16x32xf32>
      %56 = arith.addf %55, %54 : vector<16x32xf32>
      %57 = arith.divf %55, %56 : vector<16x32xf32>
      %58 = vector.extract_strided_slice %39 {offsets = [0, 64], sizes = [16, 32], strides = [1, 1]} : vector<16x128xf32> to vector<16x32xf32>
      %59 = math.tanh %58 : vector<16x32xf32>
      %60 = vector.extract_strided_slice %39 {offsets = [0, 96], sizes = [16, 32], strides = [1, 1]} : vector<16x128xf32> to vector<16x32xf32>
      %61 = arith.negf %60 : vector<16x32xf32>
      %62 = math.exp %61 : vector<16x32xf32>
      %cst_43 = arith.constant 1.000000e+00 : f32
      %63 = vector.broadcast %cst_43 : f32 to vector<16x32xf32>
      %64 = arith.addf %63, %62 : vector<16x32xf32>
      %65 = arith.divf %63, %64 : vector<16x32xf32>
      %66 = arith.mulf %57, %arg16 : vector<16x32xf32>
      %67 = arith.mulf %51, %59 : vector<16x32xf32>
      %68 = arith.addf %66, %67 : vector<16x32xf32>
      %69 = math.tanh %68 : vector<16x32xf32>
      %70 = arith.mulf %65, %69 : vector<16x32xf32>
      %71 = vector.extract_strided_slice %45 {offsets = [0, 0], sizes = [16, 32], strides = [1, 1]} : vector<16x128xf32> to vector<16x32xf32>
      %72 = arith.negf %71 : vector<16x32xf32>
      %73 = math.exp %72 : vector<16x32xf32>
      %cst_44 = arith.constant 1.000000e+00 : f32
      %74 = vector.broadcast %cst_44 : f32 to vector<16x32xf32>
      %75 = arith.addf %74, %73 : vector<16x32xf32>
      %76 = arith.divf %74, %75 : vector<16x32xf32>
      %77 = vector.extract_strided_slice %45 {offsets = [0, 32], sizes = [16, 32], strides = [1, 1]} : vector<16x128xf32> to vector<16x32xf32>
      %78 = arith.negf %77 : vector<16x32xf32>
      %79 = math.exp %78 : vector<16x32xf32>
      %cst_45 = arith.constant 1.000000e+00 : f32
      %80 = vector.broadcast %cst_45 : f32 to vector<16x32xf32>
      %81 = arith.addf %80, %79 : vector<16x32xf32>
      %82 = arith.divf %80, %81 : vector<16x32xf32>
      %83 = vector.extract_strided_slice %45 {offsets = [0, 64], sizes = [16, 32], strides = [1, 1]} : vector<16x128xf32> to vector<16x32xf32>
      %84 = math.tanh %83 : vector<16x32xf32>
      %85 = vector.extract_strided_slice %45 {offsets = [0, 96], sizes = [16, 32], strides = [1, 1]} : vector<16x128xf32> to vector<16x32xf32>
      %86 = arith.negf %85 : vector<16x32xf32>
      %87 = math.exp %86 : vector<16x32xf32>
      %cst_46 = arith.constant 1.000000e+00 : f32
      %88 = vector.broadcast %cst_46 : f32 to vector<16x32xf32>
      %89 = arith.addf %88, %87 : vector<16x32xf32>
      %90 = arith.divf %88, %89 : vector<16x32xf32>
      %91 = arith.mulf %82, %arg18 : vector<16x32xf32>
      %92 = arith.mulf %76, %84 : vector<16x32xf32>
      %93 = arith.addf %91, %92 : vector<16x32xf32>
      %94 = math.tanh %93 : vector<16x32xf32>
      %95 = arith.mulf %90, %94 : vector<16x32xf32>
      %96 = arith.index_cast %arg14 : i32 to index
      %c0_47 = arith.constant 0 : index
      %c0_48 = arith.constant 0 : index
      %97 = vector.load %arg12[%96, %c0_47, %c0_48] : memref<16x16x32xf32, #tpu.memory_space<vmem>>, vector<1x16x32xf32>
      %98 = vector.shape_cast %97 : vector<1x16x32xf32> to vector<16x32xf32>
      %99 = vector.shape_cast %70 : vector<16x32xf32> to vector<1x16x32xf32>
      tpu.vector_store %arg12[%96, %c0_47, %c0_48], %99 {strides = array<i32>} : memref<16x16x32xf32, #tpu.memory_space<vmem>>, vector<1x16x32xf32>,
      %100 = arith.index_cast %33 : i32 to index
      %c0_49 = arith.constant 0 : index
      %c0_50 = arith.constant 0 : index
      %101 = vector.load %arg13[%100, %c0_49, %c0_50] : memref<16x16x32xf32, #tpu.memory_space<vmem>>, vector<1x16x32xf32>
      %102 = vector.shape_cast %101 : vector<1x16x32xf32> to vector<16x32xf32>
      %103 = vector.shape_cast %95 : vector<16x32xf32> to vector<1x16x32xf32>
      tpu.vector_store %arg13[%100, %c0_49, %c0_50], %103 {strides = array<i32>} : memref<16x16x32xf32, #tpu.memory_space<vmem>>, vector<1x16x32xf32>,
      scf.yield %70, %68, %95, %93 : vector<16x32xf32>, vector<16x32xf32>, vector<16x32xf32>, vector<16x32xf32>
    }
    %c16_i32_14 = arith.constant 16 : i32
    %c0_15 = arith.constant 0 : index
    %c0_16 = arith.constant 0 : index
    %c0_17 = arith.constant 0 : index
    %14 = vector.load %arg12[%c0_15, %c0_16, %c0_17] : memref<16x16x32xf32, #tpu.memory_space<vmem>>, vector<16x16x32xf32>
    %15 = vector.shape_cast %14 : vector<16x16x32xf32> to vector<256x32xf32>
    %c0_18 = arith.constant 0 : index
    %c0_19 = arith.constant 0 : index
    %c0_20 = arith.constant 0 : index
    %16 = vector.load %arg13[%c0_18, %c0_19, %c0_20] : memref<16x16x32xf32, #tpu.memory_space<vmem>>, vector<16x16x32xf32>
    %17 = vector.shape_cast %16 : vector<16x16x32xf32> to vector<256x32xf32>
    %c0_21 = arith.constant 0 : index
    %c0_22 = arith.constant 0 : index
    %18 = vector.load %arg6[%c0_21, %c0_22] : memref<32x8xf32, #tpu.memory_space<vmem>>, vector<32x8xf32>
    %cst_23 = arith.constant dense<0.000000e+00> : vector<256x8xf32>
    %19 = tpu.matmul %15, %18, %cst_23 {dimension_numbers = #tpu.dot_dimension_numbers<[1], [0], [0], [1], [0, 0, 1, 1], [], []>} : vector<256x32xf32>, vector<32x8xf32>, vector<256x8xf32> -> vector<256x8xf32>
    %c0_24 = arith.constant 0 : index
    %c0_25 = arith.constant 0 : index
    %20 = vector.load %arg7[%c0_24, %c0_25] : memref<32x8xf32, #tpu.memory_space<vmem>>, vector<32x8xf32>
    %cst_26 = arith.constant dense<0.000000e+00> : vector<256x8xf32>
    %21 = tpu.matmul %17, %20, %cst_26 {dimension_numbers = #tpu.dot_dimension_numbers<[1], [0], [0], [1], [0, 0, 1, 1], [], []>} : vector<256x32xf32>, vector<32x8xf32>, vector<256x8xf32> -> vector<256x8xf32>
    %22 = arith.addf %19, %21 : vector<256x8xf32>
    %c0_27 = arith.constant 0 : index
    %c0_28 = arith.constant 0 : index
    %23 = vector.load %arg8[%c0_27, %c0_28] : memref<1x8xf32, #tpu.memory_space<vmem>>, vector<1x8xf32>
    %24 = vector.broadcast %23 : vector<1x8xf32> to vector<256x8xf32>
    %25 = arith.mulf %22, %24 : vector<256x8xf32>
    %c0_29 = arith.constant 0 : index
    %c0_30 = arith.constant 0 : index
    %26 = vector.load %arg9[%c0_29, %c0_30] : memref<1x8xf32, #tpu.memory_space<vmem>>, vector<1x8xf32>
    %27 = vector.broadcast %26 : vector<1x8xf32> to vector<256x8xf32>
    %28 = arith.addf %25, %27 : vector<256x8xf32>
    %cst_31 = arith.constant 0.000000e+00 : f32
    %29 = vector.broadcast %cst_31 : f32 to vector<256x8xf32>
    %30 = arith.maximumf %28, %29 : vector<256x8xf32>
    %31 = vector.shape_cast %30 : vector<256x8xf32> to vector<16x16x8xf32>
    %c0_32 = arith.constant 0 : index
    %c0_33 = arith.constant 0 : index
    %c0_34 = arith.constant 0 : index
    %32 = vector.load %arg10[%c0_32, %c0_33, %c0_34] : memref<16x16x8xf32, #tpu.memory_space<vmem>>, vector<16x16x8xf32>
    tpu.vector_store %arg10[%c0_32, %c0_33, %c0_34], %31 {strides = array<i32>} : memref<16x16x8xf32, #tpu.memory_space<vmem>>, vector<16x16x8xf32>,
    return
  }
  func.func @transform_0(%arg0: i32) -> (i32, i32, i32) {
    %c0_i32 = arith.constant 0 : i32
    %c0_i32_0 = arith.constant 0 : i32
    %c0_i32_1 = arith.constant 0 : i32
    return %c0_i32, %arg0, %c0_i32_0 : i32, i32, i32
  }
  func.func @transform_1(%arg0: i32) -> (i32, i32) {
    %c0_i32 = arith.constant 0 : i32
    %c0_i32_0 = arith.constant 0 : i32
    %c0_i32_1 = arith.constant 0 : i32
    return %c0_i32, %c0_i32_0 : i32, i32
  }
  func.func @transform_2(%arg0: i32) -> (i32, i32) {
    %c0_i32 = arith.constant 0 : i32
    %c0_i32_0 = arith.constant 0 : i32
    %c0_i32_1 = arith.constant 0 : i32
    return %c0_i32, %c0_i32_0 : i32, i32
  }
  func.func @transform_3(%arg0: i32) -> (i32, i32) {
    %c0_i32 = arith.constant 0 : i32
    %c0_i32_0 = arith.constant 0 : i32
    %c0_i32_1 = arith.constant 0 : i32
    return %c0_i32, %c0_i32_0 : i32, i32
  }
  func.func @transform_4(%arg0: i32) -> (i32, i32) {
    %c0_i32 = arith.constant 0 : i32
    %c0_i32_0 = arith.constant 0 : i32
    %c0_i32_1 = arith.constant 0 : i32
    return %c0_i32, %c0_i32_0 : i32, i32
  }
  func.func @transform_5(%arg0: i32) -> (i32, i32) {
    %c0_i32 = arith.constant 0 : i32
    %c0_i32_0 = arith.constant 0 : i32
    %c0_i32_1 = arith.constant 0 : i32
    return %c0_i32, %c0_i32_0 : i32, i32
  }
  func.func @transform_6(%arg0: i32) -> (i32, i32) {
    %c0_i32 = arith.constant 0 : i32
    %c0_i32_0 = arith.constant 0 : i32
    %c0_i32_1 = arith.constant 0 : i32
    return %c0_i32, %c0_i32_0 : i32, i32
  }
  func.func @transform_7(%arg0: i32) -> (i32, i32) {
    %c0_i32 = arith.constant 0 : i32
    %c0_i32_0 = arith.constant 0 : i32
    %c0_i32_1 = arith.constant 0 : i32
    return %c0_i32, %c0_i32_0 : i32, i32
  }
  func.func @transform_8(%arg0: i32) -> (i32, i32) {
    %c0_i32 = arith.constant 0 : i32
    %c0_i32_0 = arith.constant 0 : i32
    %c0_i32_1 = arith.constant 0 : i32
    return %c0_i32, %c0_i32_0 : i32, i32
  }
  func.func @transform_9(%arg0: i32) -> (i32, i32, i32) {
    %c0_i32 = arith.constant 0 : i32
    %c0_i32_0 = arith.constant 0 : i32
    %c0_i32_1 = arith.constant 0 : i32
    return %c0_i32, %arg0, %c0_i32_0 : i32, i32, i32
  }
}

</mosaic_0001>

<bundles_post_ra>
// kernel: tpu_custom_call.1
= control target key start
LH: loop header
LB: loop body
LE: loop exit
PB: predicated region body
PF: predicated region fallthrough
CT: control target
= control target key end

     0   :  { %vm176_vm0 = vcmask 1043456   ;;  %v2245_v1 = vmov 0.0   ;;  %vm79_vm1 = vcmask 31744   ;;  %v67_v43 = vlaneseq  ;;  %s2973_s1 = inlined_call_operand.vmem [shape: f32[4,256], index: 1, kind: input, shape index: {}]   ;;  %s2974_s5 = inlined_call_operand.vmem [shape: f32[32,8], index: 5, kind: input, shape index: {}]   ;;  %s2975_s6 = inlined_call_operand.vmem [shape: f32[32,8], index: 6, kind: input, shape index: {}]   ;;  %s2976_s7 = inlined_call_operand.vmem [shape: f32[1,8], index: 7, kind: input, shape index: {}]   ;;  %s2977_s8 = inlined_call_operand.vmem [shape: f32[1,8], index: 8, kind: input, shape index: {}]   ;;  %s2978_s9 = inlined_call_operand.vmem [shape: f32[16,16,8], index: 9, kind: output, shape index: {}]   ;;  %s2979_s0 = inlined_call_operand.vmem [shape: f32[16,16,4], index: 0, kind: input, shape index: {}]   ;;  %s2980_s3 = inlined_call_operand.vmem [shape: f32[32,128], index: 3, kind: input, shape index: {}]   ;;  %s2981_s4 = inlined_call_operand.vmem [shape: f32[32,128], index: 4, kind: input, shape index: {}]   ;;  %s2982_s2 = inlined_call_operand.vmem [shape: f32[1,256], index: 2, kind: input, shape index: {}]  }
   0x1   :  { %v64_v0 = vld [vmem:[%s2973_s1] sm:$0xff]  ;;  %245 = vmatprep.mubr.f32.mxu0 %v2245_v1  ;;  %341 = vmatprep.mubr.f32.mxu1 %v2245_v1  ;;  %v33_v5 = vld [vmem:[%s2979_s0 + $0x8] sm:$0xff]  ;;  %v34_v7 = vld [vmem:[%s2979_s0 + $0x10] sm:$0xff] }
   0x2   :  { %v78_v2 = vcombine.high %v64_v0, %v64_v0  ;;  %v32_v3 = vld [vmem:[%s2979_s0] sm:$0xff]  ;;  %v49_v6 = vld [vmem:[%s2979_s0 + $0x88] sm:$0xff]  ;;  %v50_v8 = vld [vmem:[%s2979_s0 + $0x90] sm:$0xff]  ;;  %v68_v44 = vshrl.u32 %v67_v43, 7 }
   0x3   :  { %v48_v4 = vld [vmem:[%s2979_s0 + $0x80] sm:$0xff]  ;;  %v35_v9 = vld [vmem:[%s2979_s0 + $0x18] sm:$0xff]  ;;  %v37_v13 = vld [vmem:[%s2979_s0 + $0x28] sm:$0xff] }
   0x4   :  { %1729 = vmatprep.subr.msk.mxu0 %vm176_vm0, %v78_v2  ;;  %2063 = vmatprep.subr.msk.mxu1 %vm176_vm0, %v78_v2  ;;  %v51_v10 = vld [vmem:[%s2979_s0 + $0x98] sm:$0xff]  ;;  %v36_v11 = vld [vmem:[%s2979_s0 + $0x20] sm:$0xff]  ;;  %v53_v14 = vld [vmem:[%s2979_s0 + $0xa8] sm:$0xff]  ;;  %v69_v45 = vsub.s32 0, %v68_v44  ;;  %v73_v47 = vsub.s32 1, %v68_v44 }
   0x5   :  { %1730 = vmatpush1.msk.msra.mxu0 %vm176_vm0, %v64_v0  ;;  %2064 = vmatpush1.msk.msra.mxu1 %vm176_vm0, %v64_v0  ;;  %v52_v12 = vld [vmem:[%s2979_s0 + $0xa0] sm:$0xff]  ;;  %v38_v15 = vld [vmem:[%s2979_s0 + $0x30] sm:$0xff]  ;;  %v39_v17 = vld [vmem:[%s2979_s0 + $0x38] sm:$0xff] }
   0x6   :  { %1731 = vmatmul.mubr.msk.f32.vlgmr.msra.gmra.mxu0 %vm79_vm1, %v32_v3  ;;  %1747 = vmatmul.mubr.msk.f32.vlgmr.msra.gmra.mxu1 %vm79_vm1, %v48_v4  ;;  %v54_v16 = vld [vmem:[%s2979_s0 + $0xb0] sm:$0xff]  ;;  %v55_v18 = vld [vmem:[%s2979_s0 + $0xb8] sm:$0xff]  ;;  %v40_v19 = vld [vmem:[%s2979_s0 + $0x40] sm:$0xff] }
   0x7   :  { %251 = vmatprep.mubr.f32.mxu0 %v2245_v1  ;;  %347 = vmatprep.mubr.f32.mxu1 %v2245_v1  ;;  %v56_v20 = vld [vmem:[%s2979_s0 + $0xc0] sm:$0xff]  ;;  %v41_v21 = vld [vmem:[%s2979_s0 + $0x48] sm:$0xff]  ;;  %v42_v23 = vld [vmem:[%s2979_s0 + $0x50] sm:$0xff] }
   0x8   :  { %v57_v22 = vld [vmem:[%s2979_s0 + $0xc8] sm:$0xff]  ;;  %v58_v24 = vld [vmem:[%s2979_s0 + $0xd0] sm:$0xff]  ;;  %v43_v25 = vld [vmem:[%s2979_s0 + $0x58] sm:$0xff] }
   0x9   :  { %v59_v26 = vld [vmem:[%s2979_s0 + $0xd8] sm:$0xff]  ;;  %v44_v27 = vld [vmem:[%s2979_s0 + $0x60] sm:$0xff]  ;;  %v45_v29 = vld [vmem:[%s2979_s0 + $0x68] sm:$0xff] }
   0xa   :  { %1732 = vmatmul.mubr.msk.f32.gmra.mxu0 %vm79_vm1, %v33_v5  ;;  %1748 = vmatmul.mubr.msk.f32.gmra.mxu1 %vm79_vm1, %v49_v6  ;;  %v60_v28 = vld [vmem:[%s2979_s0 + $0xe0] sm:$0xff]  ;;  %v61_v30 = vld [vmem:[%s2979_s0 + $0xe8] sm:$0xff]  ;;  %v46_v31 = vld [vmem:[%s2979_s0 + $0x70] sm:$0xff] }
   0xb   :  { %257 = vmatprep.mubr.f32.mxu0 %v2245_v1  ;;  %353 = vmatprep.mubr.f32.mxu1 %v2245_v1  ;;  %v62_v32 = vld [vmem:[%s2979_s0 + $0xf0] sm:$0xff]  ;;  %v47_v33 = vld [vmem:[%s2979_s0 + $0x78] sm:$0xff]  ;;  %v2464_v35 = vld [vmem:[%s2980_s3] sm:$0xff] }
   0xc   :  { %v63_v34 = vld [vmem:[%s2979_s0 + $0xf8] sm:$0xff]  ;;  %v2469_v36 = vld [vmem:[%s2980_s3 + $0x8] sm:$0xff]  ;;  %v2474_v37 = vld [vmem:[%s2980_s3 + $0x10] sm:$0xff] }
   0xd   :  { %v2479_v38 = vld [vmem:[%s2980_s3 + $0x18] sm:$0xff]  ;;  %v2484_v39 = vld [vmem:[%s2981_s4] sm:$0xff]  ;;  %v2489_v40 = vld [vmem:[%s2981_s4 + $0x8] sm:$0xff] }
   0xe   :  { %1733 = vmatmul.mubr.msk.f32.gmra.mxu0 %vm79_vm1, %v34_v7  ;;  %1749 = vmatmul.mubr.msk.f32.gmra.mxu1 %vm79_vm1, %v50_v8  ;;  %v2494_v41 = vld [vmem:[%s2981_s4 + $0x10] sm:$0xff]  ;;  %v2499_v42 = vld [vmem:[%s2981_s4 + $0x18] sm:$0xff]  ;;  %v65_v46 = vld [vmem:[%s2982_s2] sm:$0x3]  ;;  %s2588_s2 = smov 0  }
   0xf   :  { %263 = vmatprep.mubr.f32.mxu0 %v2245_v1  ;;  %359 = vmatprep.mubr.f32.mxu1 %v2245_v1  ;;  %v2504_v48 = vrot.slane %v65_v46, %v69_v45  ;;  %v2506_v49 = vrot.slane %v65_v46, %v73_v47 }
  0x12   :  { %1734 = vmatmul.mubr.msk.f32.gmra.mxu0 %vm79_vm1, %v35_v9  ;;  %1750 = vmatmul.mubr.msk.f32.gmra.mxu1 %vm79_vm1, %v51_v10 }
  0x13   :  { %269 = vmatprep.mubr.f32.mxu0 %v2245_v1  ;;  %365 = vmatprep.mubr.f32.mxu1 %v2245_v1 }
  0x16   :  { %1735 = vmatmul.mubr.msk.f32.gmra.mxu0 %vm79_vm1, %v36_v11  ;;  %1751 = vmatmul.mubr.msk.f32.gmra.mxu1 %vm79_vm1, %v52_v12 }
  0x17   :  { %275 = vmatprep.mubr.f32.mxu0 %v2245_v1  ;;  %371 = vmatprep.mubr.f32.mxu1 %v2245_v1 }
  0x1a   :  { %1736 = vmatmul.mubr.msk.f32.gmra.mxu0 %vm79_vm1, %v37_v13  ;;  %1752 = vmatmul.mubr.msk.f32.gmra.mxu1 %vm79_vm1, %v53_v14 }
  0x1b   :  { %281 = vmatprep.mubr.f32.mxu0 %v2245_v1  ;;  %377 = vmatprep.mubr.f32.mxu1 %v2245_v1 }
  0x1e   :  { %1737 = vmatmul.mubr.msk.f32.gmra.mxu0 %vm79_vm1, %v38_v15  ;;  %1753 = vmatmul.mubr.msk.f32.gmra.mxu1 %vm79_vm1, %v54_v16 }
  0x1f   :  { %287 = vmatprep.mubr.f32.mxu0 %v2245_v1  ;;  %383 = vmatprep.mubr.f32.mxu1 %v2245_v1 }
  0x22   :  { %1738 = vmatmul.mubr.msk.f32.gmra.mxu0 %vm79_vm1, %v39_v17  ;;  %1754 = vmatmul.mubr.msk.f32.gmra.mxu1 %vm79_vm1, %v55_v18 }
  0x23   :  { %293 = vmatprep.mubr.f32.mxu0 %v2245_v1  ;;  %389 = vmatprep.mubr.f32.mxu1 %v2245_v1 }
  0x26   :  { %1739 = vmatmul.mubr.msk.f32.gmra.mxu0 %vm79_vm1, %v40_v19  ;;  %1755 = vmatmul.mubr.msk.f32.gmra.mxu1 %vm79_vm1, %v56_v20 }
  0x27   :  { %299 = vmatprep.mubr.f32.mxu0 %v2245_v1  ;;  %395 = vmatprep.mubr.f32.mxu1 %v2245_v1 }
  0x2a   :  { %1740 = vmatmul.mubr.msk.f32.gmra.mxu0 %vm79_vm1, %v41_v21  ;;  %1756 = vmatmul.mubr.msk.f32.gmra.mxu1 %vm79_vm1, %v57_v22 }
  0x2b   :  { %305 = vmatprep.mubr.f32.mxu0 %v2245_v1  ;;  %401 = vmatprep.mubr.f32.mxu1 %v2245_v1 }
  0x2e   :  { %1741 = vmatmul.mubr.msk.f32.gmra.mxu0 %vm79_vm1, %v42_v23  ;;  %1757 = vmatmul.mubr.msk.f32.gmra.mxu1 %vm79_vm1, %v58_v24 }
  0x2f   :  { %311 = vmatprep.mubr.f32.mxu0 %v2245_v1  ;;  %407 = vmatprep.mubr.f32.mxu1 %v2245_v1 }
  0x32   :  { %1742 = vmatmul.mubr.msk.f32.gmra.mxu0 %vm79_vm1, %v43_v25  ;;  %1758 = vmatmul.mubr.msk.f32.gmra.mxu1 %vm79_vm1, %v59_v26 }
  0x33   :  { %317 = vmatprep.mubr.f32.mxu0 %v2245_v1  ;;  %413 = vmatprep.mubr.f32.mxu1 %v2245_v1 }
  0x36   :  { %1743 = vmatmul.mubr.msk.f32.gmra.mxu0 %vm79_vm1, %v44_v27  ;;  %1759 = vmatmul.mubr.msk.f32.gmra.mxu1 %vm79_vm1, %v60_v28 }
  0x37   :  { %323 = vmatprep.mubr.f32.mxu0 %v2245_v1  ;;  %419 = vmatprep.mubr.f32.mxu1 %v2245_v1 }
  0x3a   :  { %1744 = vmatmul.mubr.msk.f32.gmra.mxu0 %vm79_vm1, %v45_v29  ;;  %1760 = vmatmul.mubr.msk.f32.gmra.mxu1 %vm79_vm1, %v61_v30 }
  0x3b   :  { %329 = vmatprep.mubr.f32.mxu0 %v2245_v1  ;;  %425 = vmatprep.mubr.f32.mxu1 %v2245_v1 }
  0x3e   :  { %1745 = vmatmul.mubr.msk.f32.gmra.mxu0 %vm79_vm1, %v46_v31  ;;  %1761 = vmatmul.mubr.msk.f32.gmra.mxu1 %vm79_vm1, %v62_v32 }
  0x3f   :  { %335 = vmatprep.mubr.f32.mxu0 %v2245_v1  ;;  %431 = vmatprep.mubr.f32.mxu1 %v2245_v1 }
  0x42   :  { %1746 = vmatmul.mubr.msk.f32.gmra.mxu0 %vm79_vm1, %v47_v33  ;;  %1762 = vmatmul.mubr.msk.f32.gmra.mxu1 %vm79_vm1, %v63_v34 }
  0xc6   :  { %v247_v50 = vpop.f32.mrf.mxu0  ;;  %v343_v51 = vpop.f32.mrf.mxu1 }
  0xc7   :  { %v248_v52 = vadd.f32 %v247_v50, %v2504_v48  ;;  %v344_v53 = vadd.f32 %v343_v51, %v2504_v48 }
  0xc8   :  { %v249_v54 = vpop.f32.mrf.mxu0  ;;  %v345_v55 = vpop.f32.mrf.mxu1 }
  0xc9   :  { %438 = vst [vmem:[#allocation2] sm:$0xff] %v248_v52  ;;  %470 = vst [vmem:[#allocation2 + $0x100] sm:$0xff] %v344_v53  ;;  %v250_v56 = vadd.f32 %v249_v54, %v2506_v49  ;;  %v346_v57 = vadd.f32 %v345_v55, %v2506_v49 }
  0xca   :  { %v253_v58 = vpop.f32.mrf.mxu0  ;;  %v349_v59 = vpop.f32.mrf.mxu1 }
  0xcb   :  { %439 = vst [vmem:[#allocation2 + $0x8] sm:$0xff] %v250_v56  ;;  %471 = vst [vmem:[#allocation2 + $0x108] sm:$0xff] %v346_v57  ;;  %v254_v60 = vadd.f32 %v253_v58, %v2504_v48  ;;  %v350_v61 = vadd.f32 %v349_v59, %v2504_v48 }
  0xcc   :  { %v255_v62 = vpop.f32.mrf.mxu0  ;;  %v351_v63 = vpop.f32.mrf.mxu1 }
  0xcd   :  { %440 = vst [vmem:[#allocation2 + $0x10] sm:$0xff] %v254_v60  ;;  %472 = vst [vmem:[#allocation2 + $0x110] sm:$0xff] %v350_v61  ;;  %v256_v0 = vadd.f32 %v255_v62, %v2506_v49  ;;  %v352_v1 = vadd.f32 %v351_v63, %v2506_v49 }
  0xce   :  { %v259_v2 = vpop.f32.mrf.mxu0  ;;  %v355_v3 = vpop.f32.mrf.mxu1 }
  0xcf   :  { %441 = vst [vmem:[#allocation2 + $0x18] sm:$0xff] %v256_v0  ;;  %473 = vst [vmem:[#allocation2 + $0x118] sm:$0xff] %v352_v1  ;;  %v260_v4 = vadd.f32 %v259_v2, %v2504_v48  ;;  %v356_v5 = vadd.f32 %v355_v3, %v2504_v48 }
  0xd0   :  { %v261_v6 = vpop.f32.mrf.mxu0  ;;  %v357_v7 = vpop.f32.mrf.mxu1 }
  0xd1   :  { %442 = vst [vmem:[#allocation2 + $0x20] sm:$0xff] %v260_v4  ;;  %474 = vst [vmem:[#allocation2 + $0x120] sm:$0xff] %v356_v5  ;;  %v262_v8 = vadd.f32 %v261_v6, %v2506_v49  ;;  %v358_v9 = vadd.f32 %v357_v7, %v2506_v49 }
  0xd2   :  { %v265_v10 = vpop.f32.mrf.mxu0  ;;  %v361_v11 = vpop.f32.mrf.mxu1 }
  0xd3   :  { %443 = vst [vmem:[#allocation2 + $0x28] sm:$0xff] %v262_v8  ;;  %475 = vst [vmem:[#allocation2 + $0x128] sm:$0xff] %v358_v9  ;;  %v266_v12 = vadd.f32 %v265_v10, %v2504_v48  ;;  %v362_v13 = vadd.f32 %v361_v11, %v2504_v48 }
  0xd4   :  { %v267_v14 = vpop.f32.mrf.mxu0  ;;  %v363_v15 = vpop.f32.mrf.mxu1 }
  0xd5   :  { %444 = vst [vmem:[#allocation2 + $0x30] sm:$0xff] %v266_v12  ;;  %476 = vst [vmem:[#allocation2 + $0x130] sm:$0xff] %v362_v13  ;;  %v268_v16 = vadd.f32 %v267_v14, %v2506_v49  ;;  %v364_v17 = vadd.f32 %v363_v15, %v2506_v49 }
  0xd6   :  { %v271_v18 = vpop.f32.mrf.mxu0  ;;  %v367_v19 = vpop.f32.mrf.mxu1 }
  0xd7   :  { %445 = vst [vmem:[#allocation2 + $0x38] sm:$0xff] %v268_v16  ;;  %477 = vst [vmem:[#allocation2 + $0x138] sm:$0xff] %v364_v17  ;;  %v272_v20 = vadd.f32 %v271_v18, %v2504_v48  ;;  %v368_v21 = vadd.f32 %v367_v19, %v2504_v48 }
  0xd8   :  { %v273_v22 = vpop.f32.mrf.mxu0  ;;  %v369_v23 = vpop.f32.mrf.mxu1 }
  0xd9   :  { %446 = vst [vmem:[#allocation2 + $0x40] sm:$0xff] %v272_v20  ;;  %478 = vst [vmem:[#allocation2 + $0x140] sm:$0xff] %v368_v21  ;;  %v274_v24 = vadd.f32 %v273_v22, %v2506_v49  ;;  %v370_v25 = vadd.f32 %v369_v23, %v2506_v49 }
  0xda   :  { %v277_v26 = vpop.f32.mrf.mxu0  ;;  %v373_v27 = vpop.f32.mrf.mxu1 }
  0xdb   :  { %447 = vst [vmem:[#allocation2 + $0x48] sm:$0xff] %v274_v24  ;;  %479 = vst [vmem:[#allocation2 + $0x148] sm:$0xff] %v370_v25  ;;  %v278_v28 = vadd.f32 %v277_v26, %v2504_v48  ;;  %v374_v29 = vadd.f32 %v373_v27, %v2504_v48 }
  0xdc   :  { %v279_v30 = vpop.f32.mrf.mxu0  ;;  %v375_v31 = vpop.f32.mrf.mxu1 }
  0xdd   :  { %448 = vst [vmem:[#allocation2 + $0x50] sm:$0xff] %v278_v28  ;;  %480 = vst [vmem:[#allocation2 + $0x150] sm:$0xff] %v374_v29  ;;  %v280_v32 = vadd.f32 %v279_v30, %v2506_v49  ;;  %v376_v33 = vadd.f32 %v375_v31, %v2506_v49 }
  0xde   :  { %v283_v34 = vpop.f32.mrf.mxu0  ;;  %v379_v43 = vpop.f32.mrf.mxu1 }
  0xdf   :  { %449 = vst [vmem:[#allocation2 + $0x58] sm:$0xff] %v280_v32  ;;  %481 = vst [vmem:[#allocation2 + $0x158] sm:$0xff] %v376_v33  ;;  %v284_v44 = vadd.f32 %v283_v34, %v2504_v48  ;;  %v380_v45 = vadd.f32 %v379_v43, %v2504_v48 }
  0xe0   :  { %v285_v46 = vpop.f32.mrf.mxu0  ;;  %v381_v47 = vpop.f32.mrf.mxu1 }
  0xe1   :  { %450 = vst [vmem:[#allocation2 + $0x60] sm:$0xff] %v284_v44  ;;  %482 = vst [vmem:[#allocation2 + $0x160] sm:$0xff] %v380_v45  ;;  %v286_v50 = vadd.f32 %v285_v46, %v2506_v49  ;;  %v382_v51 = vadd.f32 %v381_v47, %v2506_v49 }
  0xe2   :  { %v289_v52 = vpop.f32.mrf.mxu0  ;;  %v385_v53 = vpop.f32.mrf.mxu1 }
  0xe3   :  { %451 = vst [vmem:[#allocation2 + $0x68] sm:$0xff] %v286_v50  ;;  %483 = vst [vmem:[#allocation2 + $0x168] sm:$0xff] %v382_v51  ;;  %v290_v54 = vadd.f32 %v289_v52, %v2504_v48  ;;  %v386_v55 = vadd.f32 %v385_v53, %v2504_v48 }
  0xe4   :  { %v291_v56 = vpop.f32.mrf.mxu0  ;;  %v387_v57 = vpop.f32.mrf.mxu1 }
  0xe5   :  { %452 = vst [vmem:[#allocation2 + $0x70] sm:$0xff] %v290_v54  ;;  %484 = vst [vmem:[#allocation2 + $0x170] sm:$0xff] %v386_v55  ;;  %v292_v58 = vadd.f32 %v291_v56, %v2506_v49  ;;  %v388_v59 = vadd.f32 %v387_v57, %v2506_v49 }
  0xe6   :  { %v295_v60 = vpop.f32.mrf.mxu0  ;;  %v391_v61 = vpop.f32.mrf.mxu1 }
  0xe7   :  { %453 = vst [vmem:[#allocation2 + $0x78] sm:$0xff] %v292_v58  ;;  %485 = vst [vmem:[#allocation2 + $0x178] sm:$0xff] %v388_v59  ;;  %v296_v62 = vadd.f32 %v295_v60, %v2504_v48  ;;  %v392_v63 = vadd.f32 %v391_v61, %v2504_v48 }
  0xe8   :  { %v297_v0 = vpop.f32.mrf.mxu0  ;;  %v393_v1 = vpop.f32.mrf.mxu1 }
  0xe9   :  { %454 = vst [vmem:[#allocation2 + $0x80] sm:$0xff] %v296_v62  ;;  %486 = vst [vmem:[#allocation2 + $0x180] sm:$0xff] %v392_v63  ;;  %v298_v2 = vadd.f32 %v297_v0, %v2506_v49  ;;  %v394_v3 = vadd.f32 %v393_v1, %v2506_v49 }
  0xea   :  { %v301_v4 = vpop.f32.mrf.mxu0  ;;  %v397_v5 = vpop.f32.mrf.mxu1 }
  0xeb   :  { %455 = vst [vmem:[#allocation2 + $0x88] sm:$0xff] %v298_v2  ;;  %487 = vst [vmem:[#allocation2 + $0x188] sm:$0xff] %v394_v3  ;;  %v302_v6 = vadd.f32 %v301_v4, %v2504_v48  ;;  %v398_v7 = vadd.f32 %v397_v5, %v2504_v48 }
  0xec   :  { %v303_v8 = vpop.f32.mrf.mxu0  ;;  %v399_v9 = vpop.f32.mrf.mxu1 }
  0xed   :  { %456 = vst [vmem:[#allocation2 + $0x90] sm:$0xff] %v302_v6  ;;  %488 = vst [vmem:[#allocation2 + $0x190] sm:$0xff] %v398_v7  ;;  %v304_v10 = vadd.f32 %v303_v8, %v2506_v49  ;;  %v400_v11 = vadd.f32 %v399_v9, %v2506_v49  ;;  %v2572_v6 = vmov 0.0   ;;  %v2574_v7 = vmov 0.0  }
  0xee   :  { %v307_v12 = vpop.f32.mrf.mxu0  ;;  %v403_v13 = vpop.f32.mrf.mxu1  ;;  %v2576_v8 = vmov 0.0   ;;  %v2578_v9 = vmov 0.0  }
  0xef   :  { %457 = vst [vmem:[#allocation2 + $0x98] sm:$0xff] %v304_v10  ;;  %489 = vst [vmem:[#allocation2 + $0x198] sm:$0xff] %v400_v11  ;;  %v308_v14 = vadd.f32 %v307_v12, %v2504_v48  ;;  %v404_v15 = vadd.f32 %v403_v13, %v2504_v48  ;;  %v2580_v10 = vmov 0.0   ;;  %v2584_v11 = vmov 0.0  }
  0xf0   :  { %v309_v16 = vpop.f32.mrf.mxu0  ;;  %v405_v17 = vpop.f32.mrf.mxu1  ;;  %v2586_v12 = vmov 0.0  }
  0xf1   :  { %458 = vst [vmem:[#allocation2 + $0xa0] sm:$0xff] %v308_v14  ;;  %490 = vst [vmem:[#allocation2 + $0x1a0] sm:$0xff] %v404_v15  ;;  %v310_v18 = vadd.f32 %v309_v16, %v2506_v49  ;;  %v406_v19 = vadd.f32 %v405_v17, %v2506_v49 }
  0xf2   :  { %v313_v20 = vpop.f32.mrf.mxu0  ;;  %v409_v21 = vpop.f32.mrf.mxu1 }
  0xf3   :  { %459 = vst [vmem:[#allocation2 + $0xa8] sm:$0xff] %v310_v18  ;;  %491 = vst [vmem:[#allocation2 + $0x1a8] sm:$0xff] %v406_v19  ;;  %v314_v22 = vadd.f32 %v313_v20, %v2504_v48  ;;  %v410_v23 = vadd.f32 %v409_v21, %v2504_v48 }
  0xf4   :  { %v315_v24 = vpop.f32.mrf.mxu0  ;;  %v411_v25 = vpop.f32.mrf.mxu1 }
  0xf5   :  { %460 = vst [vmem:[#allocation2 + $0xb0] sm:$0xff] %v314_v22  ;;  %492 = vst [vmem:[#allocation2 + $0x1b0] sm:$0xff] %v410_v23  ;;  %v316_v26 = vadd.f32 %v315_v24, %v2506_v49  ;;  %v412_v27 = vadd.f32 %v411_v25, %v2506_v49 }
  0xf6   :  { %v319_v28 = vpop.f32.mrf.mxu0  ;;  %v415_v29 = vpop.f32.mrf.mxu1 }
  0xf7   :  { %461 = vst [vmem:[#allocation2 + $0xb8] sm:$0xff] %v316_v26  ;;  %493 = vst [vmem:[#allocation2 + $0x1b8] sm:$0xff] %v412_v27  ;;  %v320_v30 = vadd.f32 %v319_v28, %v2504_v48  ;;  %v416_v31 = vadd.f32 %v415_v29, %v2504_v48 }
  0xf8   :  { %v321_v32 = vpop.f32.mrf.mxu0  ;;  %v417_v33 = vpop.f32.mrf.mxu1 }
  0xf9   :  { %462 = vst [vmem:[#allocation2 + $0xc0] sm:$0xff] %v320_v30  ;;  %494 = vst [vmem:[#allocation2 + $0x1c0] sm:$0xff] %v416_v31  ;;  %v322_v34 = vadd.f32 %v321_v32, %v2506_v49  ;;  %v418_v43 = vadd.f32 %v417_v33, %v2506_v49 }
  0xfa   :  { %v325_v44 = vpop.f32.mrf.mxu0  ;;  %v421_v45 = vpop.f32.mrf.mxu1 }
  0xfb   :  { %463 = vst [vmem:[#allocation2 + $0xc8] sm:$0xff] %v322_v34  ;;  %495 = vst [vmem:[#allocation2 + $0x1c8] sm:$0xff] %v418_v43  ;;  %v326_v46 = vadd.f32 %v325_v44, %v2504_v48  ;;  %v422_v47 = vadd.f32 %v421_v45, %v2504_v48 }
  0xfc   :  { %v327_v50 = vpop.f32.mrf.mxu0  ;;  %v423_v51 = vpop.f32.mrf.mxu1 }
  0xfd   :  { %464 = vst [vmem:[#allocation2 + $0xd0] sm:$0xff] %v326_v46  ;;  %496 = vst [vmem:[#allocation2 + $0x1d0] sm:$0xff] %v422_v47  ;;  %v328_v52 = vadd.f32 %v327_v50, %v2506_v49  ;;  %v424_v53 = vadd.f32 %v423_v51, %v2506_v49 }
  0xfe   :  { %v331_v54 = vpop.f32.mrf.mxu0  ;;  %v427_v55 = vpop.f32.mrf.mxu1 }
  0xff   :  { %465 = vst [vmem:[#allocation2 + $0xd8] sm:$0xff] %v328_v52  ;;  %497 = vst [vmem:[#allocation2 + $0x1d8] sm:$0xff] %v424_v53  ;;  %v332_v56 = vadd.f32 %v331_v54, %v2504_v48  ;;  %v428_v57 = vadd.f32 %v427_v55, %v2504_v48 }
 0x100   :  { %v333_v58 = vpop.f32.mrf.mxu0  ;;  %v429_v59 = vpop.f32.mrf.mxu1 }
 0x101   :  { %466 = vst [vmem:[#allocation2 + $0xe0] sm:$0xff] %v332_v56  ;;  %498 = vst [vmem:[#allocation2 + $0x1e0] sm:$0xff] %v428_v57  ;;  %v334_v60 = vadd.f32 %v333_v58, %v2506_v49  ;;  %v430_v61 = vadd.f32 %v429_v59, %v2506_v49 }
 0x102   :  { %v337_v62 = vpop.f32.mrf.mxu0  ;;  %v433_v63 = vpop.f32.mrf.mxu1 }
 0x103   :  { %467 = vst [vmem:[#allocation2 + $0xe8] sm:$0xff] %v334_v60  ;;  %499 = vst [vmem:[#allocation2 + $0x1e8] sm:$0xff] %v430_v61  ;;  %v338_v0 = vadd.f32 %v337_v62, %v2504_v48  ;;  %v434_v1 = vadd.f32 %v433_v63, %v2504_v48  ;;  %v2582_v48 = vmov 0.0  }
 0x104   :  { %v339_v2 = vpop.f32.mrf.mxu0  ;;  %v435_v3 = vpop.f32.mrf.mxu1 }
 0x105   :  { %468 = vst [vmem:[#allocation2 + $0xf0] sm:$0xff] %v338_v0  ;;  %500 = vst [vmem:[#allocation2 + $0x1f0] sm:$0xff] %v434_v1  ;;  %v340_v4 = vadd.f32 %v339_v2, %v2506_v49  ;;  %v436_v5 = vadd.f32 %v435_v3, %v2506_v49 }
 0x107   :  { %469 = vst [vmem:[#allocation2 + $0xf8] sm:$0xff] %v340_v4  ;;  %501 = vst [vmem:[#allocation2 + $0x1f8] sm:$0xff] %v436_v5 }
 0x108 LB: > { %1929 = vmatprep.subr.mxu0 %v2479_v38  ;;  %1940 = vmatprep.subr.mxu1 %v2499_v42  ;;  %s2246_s4 = smov 32   ;;  %vm536_vm2 = vcmask 261120   ;;  %s1843_s24 = sshll.u32 %s2243_s2, 5  ;;  %s2243_s2 = sphi %s2588_s2, %s515_s2   ;;  %v2239_v12 = vphi %v2586_v12, %v756_v12   ;;  %v2235_v11 = vphi %v2584_v11, %v757_v11   ;;  %v2231_v48 = vphi %v2582_v48, %v744_v48   ;;  %v2227_v10 = vphi %v2580_v10, %v745_v10   ;;  %v2223_v9 = vphi %v2578_v9, %v804_v9   ;;  %v2219_v8 = vphi %v2576_v8, %v805_v8   ;;  %v2215_v7 = vphi %v2574_v7, %v792_v7   ;;  %v2211_v6 = vphi %v2572_v6, %v793_v6  }
 0x109   : > { %1930 = vmatpush3.msra.mxu0 %v2479_v38  ;;  %1941 = vmatpush3.msra.mxu1 %v2499_v42  ;;  %s524_s25 = ssub.s32 15, %s2243_s2  ;;  %s527_s27 = scalar_lea.vmem [#allocation2], %s1843_s24 }
 0x10a   : > { %532 = vrot.lane.b32.xlu0 %v2239_v12, %s2246_s4  ;;  %534 = vrot.lane.b32.xlu1 %v2235_v11, %s2246_s4  ;;  %s1844_s26 = sshll.u32 %s524_s25, 5  ;;  %s2247_s29 = smov 64  }
 0x10b   : > { %1931 = vmatprep.subr.mxu0 %v2474_v37  ;;  %1942 = vmatprep.subr.mxu1 %v2494_v41  ;;  %s620_s28 = scalar_lea.vmem [#allocation2], %s1844_s26  ;;  %s1775_s30 = sshll.u32 %s2243_s2, 4 }
 0x10c   : > { %1932 = vmatpush3.msra.mxu0 %v2474_v37  ;;  %1943 = vmatpush3.msra.mxu1 %v2494_v41  ;;  %s1776_s10 = sshll.u32 %s524_s25, 4  ;;  %s815_s11 = scalar_lea.vmem [#allocation3], %s1775_s30 }
 0x10d   : > { %1933 = vmatprep.subr.mxu0 %v2469_v36  ;;  %1944 = vmatprep.subr.mxu1 %v2489_v40  ;;  %s827_s12 = scalar_lea.vmem [#allocation4], %s1776_s10  ;;  %s515_s2 = sadd.s32 1, %s2243_s2  }
 0x10e   : > { %625 = vrot.lane.b32.xlu0 %v2223_v9, %s2246_s4  ;;  %627 = vrot.lane.b32.xlu1 %v2219_v8, %s2246_s4  ;;  %v529_v16 = vld [vmem:[%s527_s27 + $0x10] sm:$0xff]  ;;  %v528_v18 = vld [vmem:[%s527_s27] sm:$0xff]  ;;  %p512_p0 = scmp.ge.s32.totalorder %s515_s2, 16  }
 0x10f   : > { %1934 = vmatpush3.msra.mxu0 %v2469_v36  ;;  %1945 = vmatpush3.msra.mxu1 %v2489_v40  ;;  %v622_v21 = vld [vmem:[%s620_s28 + $0x18] sm:$0xff]  ;;  %v621_v24 = vld [vmem:[%s620_s28 + $0x8] sm:$0xff]  ;;  %v898_v37 = vld [vmem:[%s2975_s6] sm:$0xff] (%p512_p0)  ;;  %vm1655_vm3 = vcmask (%p512_p0), 64512  }
 0x110   : > { %1935 = vmatprep.subr.mxu0 %v2464_v35  ;;  %1946 = vmatprep.subr.mxu1 %v2484_v39  ;;  %v895_v36 = vld [vmem:[%s2974_s5 + $0x8] sm:$0xff] (%p512_p0)  ;;  %v894_v38 = vld [vmem:[%s2974_s5] sm:$0xff] (%p512_p0) }
 0x111   : > { %1936 = vmatpush3.msra.mxu0 %v2464_v35  ;;  %1947 = vmatpush3.msra.mxu1 %v2484_v39  ;;  %v899_v35 = vld [vmem:[%s2975_s6 + $0x8] sm:$0xff] (%p512_p0) }
 0x17c   : > { %v533_v49 = vpop.permute.xlu0 %532  ;;  %v535_v13 = vpop.permute.xlu1 %534 }
 0x17d   : > { %1937 = vmatprep.mubr.msk.f32.mxu0 %vm536_vm2, %v533_v49 }
 0x17e   : > { %1938 = vmatmul.mubr.msk.f32.vlgmr.msra.gmra.mxu0 %vm536_vm2, %v535_v13 }
 0x180   : > { %v626_v14 = vpop.permute.xlu0 %625  ;;  %v628_v15 = vpop.permute.xlu1 %627 }
 0x181   : > { %1948 = vmatprep.mubr.msk.f32.mxu1 %vm536_vm2, %v626_v14 }
 0x182   : > { %1949 = vmatmul.mubr.msk.f32.vlgmr.msra.gmra.mxu1 %vm536_vm2, %v628_v15 }
 0x23e   : > { %v1939_v17 = vpop.f32.mrf.mxu0 }
 0x23f   : > { %v617_v19 = vadd.f32 %v1939_v17, %v529_v16 }
 0x240   : > { %v607_v20 = vpop.f32.mrf.mxu0 }
 0x241   : > { %2141 = vtanh.f32 %v617_v19  ;;  %v616_v22 = vadd.f32 %v607_v20, %v528_v18  ;;  %v1772_v32 = vmul.f32 -1.442695, %v617_v19 }
 0x242   : > { %v1950_v23 = vpop.f32.mrf.mxu1 }
 0x243   : > { %v709_v25 = vadd.f32 %v1950_v23, %v622_v21  ;;  %2143 = vtanh.f32 %v616_v22  ;;  %v1771_v33 = vmul.f32 -1.442695, %v616_v22 }
 0x244   : > { %v699_v26 = vpop.f32.mrf.mxu1 }
 0x245   : > { %v708_v27 = vadd.f32 %v699_v26, %v621_v24  ;;  %2145 = vtanh.f32 %v709_v25  ;;  %v1774_v34 = vmul.f32 -1.442695, %v709_v25  ;;  %v901_v24 = vld [vmem:[%s2975_s6 + $0x18] sm:$0xff] (%p512_p0)  ;;  %v900_v26 = vld [vmem:[%s2975_s6 + $0x10] sm:$0xff] (%p512_p0) }
 0x246   :  { %v897_v25 = vld [vmem:[%s2974_s5 + $0x18] sm:$0xff] (%p512_p0)  ;;  %1951 = vmatprep.subr.mxu0 (%p512_p0), %v901_v24 }
 0x247   : > { %2147 = vtanh.f32 %v708_v27  ;;  %v1773_v43 = vmul.f32 -1.442695, %v708_v27  ;;  %2007 = vmatprep.subr.mxu1 (%p512_p0), %v897_v25  ;;  %v896_v27 = vld [vmem:[%s2974_s5 + $0x10] sm:$0xff] (%p512_p0)  ;;  %1952 = vmatpush3.msra.mxu0 (%p512_p0), %v901_v24 }
 0x248   : > { %2149 = vpow2.f32 %v1772_v32  ;;  %2008 = vmatpush3.msra.mxu1 (%p512_p0), %v897_v25  ;;  %1953 = vmatprep.subr.mxu0 (%p512_p0), %v900_v26 }
 0x249   : > { %2151 = vpow2.f32 %v1771_v33  ;;  %2009 = vmatprep.subr.mxu1 (%p512_p0), %v896_v27  ;;  %1954 = vmatpush3.msra.mxu0 (%p512_p0), %v900_v26 }
 0x24a   : > { %2153 = vpow2.f32 %v1774_v34  ;;  %2010 = vmatpush3.msra.mxu1 (%p512_p0), %v896_v27  ;;  %1955 = vmatprep.subr.mxu0 (%p512_p0), %v899_v35 }
 0x24b   : > { %2155 = vpow2.f32 %v1773_v43  ;;  %2011 = vmatprep.subr.mxu1 (%p512_p0), %v895_v36  ;;  %1956 = vmatpush3.msra.mxu0 (%p512_p0), %v899_v35 }
 0x24c   :  { %2012 = vmatpush3.msra.mxu1 (%p512_p0), %v895_v36  ;;  %1957 = vmatprep.subr.mxu0 (%p512_p0), %v898_v37 }
 0x24d   :  { %2013 = vmatprep.subr.mxu1 (%p512_p0), %v894_v38  ;;  %1958 = vmatpush3.msra.mxu0 (%p512_p0), %v898_v37 }
 0x24e   : > { %v2142_v28 = vpop.eup %2141  ;;  %2014 = vmatpush3.msra.mxu1 (%p512_p0), %v894_v38 }
 0x24f   : > { %730 = vrot.lane.b32.xlu1 %v2142_v28, %s2247_s29 }
 0x250   : > { %v2144_v29 = vpop.eup %2143 }
 0x251   : > { %728 = vrot.lane.b32.xlu0 %v2144_v29, %s2247_s29 }
 0x252   : > { %v2146_v30 = vpop.eup %2145 }
 0x253   : > { %778 = vrot.lane.b32.xlu1 %v2146_v30, %s2247_s29 }
 0x254   : > { %v2148_v31 = vpop.eup %2147 }
 0x255   : > { %776 = vrot.lane.b32.xlu0 %v2148_v31, %s2247_s29  ;;  %v2150_v44 = vpop.eup %2149 }
 0x256   : > { %v2152_v45 = vpop.eup %2151  ;;  %v717_v46 = vadd.f32 1.0, %v2150_v44 }
 0x257   : > { %v2154_v47 = vpop.eup %2153  ;;  %v716_v50 = vadd.f32 1.0, %v2152_v45 }
 0x258   : > { %v2156_v51 = vpop.eup %2155  ;;  %2157 = vrcp.f32 %v717_v46  ;;  %v765_v52 = vadd.f32 1.0, %v2154_v47 }
 0x259   : > { %2159 = vrcp.f32 %v716_v50  ;;  %v764_v53 = vadd.f32 1.0, %v2156_v51 }
 0x25a   : > { %2161 = vrcp.f32 %v765_v52 }
 0x25b   : > { %2163 = vrcp.f32 %v764_v53 }
 0x265   : > { %v2158_v54 = vpop.eup %2157 }
 0x266   : > { %v2160_v57 = vpop.eup %2159  ;;  %v725_v2 = vmul.f32 %v2227_v10, %v2158_v54 }
 0x267   : > { %v2162_v60 = vpop.eup %2161  ;;  %v724_v4 = vmul.f32 %v2231_v48, %v2160_v57 }
 0x268   : > { %v2164_v63 = vpop.eup %2163  ;;  %v773_v8 = vmul.f32 %v2211_v6, %v2162_v60 }
 0x269   : > { %v772_v11 = vmul.f32 %v2215_v7, %v2164_v63 }
 0x2c1   : > { %v731_v55 = vpop.permute.xlu1 %730 }
 0x2c2   : > { %v735_v56 = vmul.f32 %v2158_v54, %v731_v55 }
 0x2c3   : > { %v729_v58 = vpop.permute.xlu0 %728 }
 0x2c4   : > { %740 = vrot.lane.b32.xlu1 %v735_v56, %s2246_s4  ;;  %v734_v59 = vmul.f32 %v2160_v57, %v729_v58 }
 0x2c5   : > { %v779_v61 = vpop.permute.xlu1 %778 }
 0x2c6   : > { %v783_v62 = vmul.f32 %v2162_v60, %v779_v61  ;;  %738 = vrot.lane.b32.xlu0 %v734_v59, %s2246_s4 }
 0x2c7   : > { %v777_v0 = vpop.permute.xlu0 %776 }
 0x2c8   : > { %v782_v1 = vmul.f32 %v2164_v63, %v777_v0  ;;  %788 = vrot.lane.b32.xlu1 %v783_v62, %s2246_s4 }
 0x2ca   : > { %786 = vrot.lane.b32.xlu0 %v782_v1, %s2246_s4 }
 0x336   : > { %v741_v3 = vpop.permute.xlu1 %740 }
 0x337   : > { %v745_v10 = vadd.f32 %v741_v3, %v725_v2  }
 0x338   : > { %v739_v5 = vpop.permute.xlu0 %738 }
 0x339   : > { %2165 = vtanh.f32 %v745_v10  ;;  %v744_v48 = vadd.f32 %v739_v5, %v724_v4  }
 0x33a   : > { %v789_v9 = vpop.permute.xlu1 %788 }
 0x33b   : > { %2167 = vtanh.f32 %v744_v48  ;;  %v793_v6 = vadd.f32 %v789_v9, %v773_v8  }
 0x33c   : > { %v787_v12 = vpop.permute.xlu0 %786 }
 0x33d   : > { %2169 = vtanh.f32 %v793_v6  ;;  %v792_v7 = vadd.f32 %v787_v12, %v772_v11  }
 0x33f   : > { %2171 = vtanh.f32 %v792_v7 }
 0x346   : > { %v2166_v49 = vpop.eup %2165 }
 0x347   : > { %752 = vrot.lane.b32.xlu1 %v2166_v49, %s2247_s29 }
 0x348   : > { %v2168_v13 = vpop.eup %2167 }
 0x349   : > { %750 = vrot.lane.b32.xlu0 %v2168_v13, %s2247_s29 }
 0x34a   : > { %v2170_v14 = vpop.eup %2169 }
 0x34b   : > { %800 = vrot.lane.b32.xlu1 %v2170_v14, %s2247_s29 }
 0x34c   : > { %v2172_v15 = vpop.eup %2171 }
 0x34d   : > { %798 = vrot.lane.b32.xlu0 %v2172_v15, %s2247_s29 }
 0x3b9   : > { %v753_v16 = vpop.permute.xlu1 %752 }
 0x3ba   : > { %v757_v11 = vmul.f32 %v2158_v54, %v753_v16  }
 0x3bb   : > { %v751_v17 = vpop.permute.xlu0 %750 }
 0x3bc   : > { %810 = vrot.lane.b32.xlu1 %v757_v11, %s2246_s4  ;;  %v756_v12 = vmul.f32 %v2160_v57, %v751_v17  }
 0x3bd   : > { %v801_v18 = vpop.permute.xlu1 %800 }
 0x3be   : > { %v805_v8 = vmul.f32 %v2162_v60, %v801_v18   ;;  %808 = vrot.lane.b32.xlu0 %v756_v12, %s2246_s4 }
 0x3bf   : > { %v799_v19 = vpop.permute.xlu0 %798 }
 0x3c0   : > { %v804_v9 = vmul.f32 %v2164_v63, %v799_v19   ;;  %822 = vrot.lane.b32.xlu1 %v805_v8, %s2246_s4 }
 0x3c2   : > { %820 = vrot.lane.b32.xlu0 %v804_v9, %s2246_s4 }
 0x42e   : > { %v811_v20 = vpop.permute.xlu1 %810 }
 0x42f   : > { %817 = vst.msk [vmem:[%s815_s11 + $0x8] sm:$0xff] %vm536_vm2, %v811_v20 }
 0x430   : > { %v809_v21 = vpop.permute.xlu0 %808 }
 0x431   : > { %816 = vst.msk [vmem:[%s815_s11] sm:$0xff] %vm536_vm2, %v809_v21  ;;  %514 = sbr.rel (!%p512_p0) target bundleno = 264 (0x108), region = 67 }
 0x432   : > { %v823_v22 = vpop.permute.xlu1 %822 }
 0x433   : > { %829 = vst.msk [vmem:[%s827_s12 + $0x8] sm:$0xff] %vm536_vm2, %v823_v22 }
 0x434   : > { %v821_v23 = vpop.permute.xlu0 %820 }
 0x435   : > { %828 = vst.msk [vmem:[%s827_s12] sm:$0xff] %vm536_vm2, %v821_v23 }
 0x438   :  { %v830_v40 = vld [vmem:[#allocation3] sm:$0xff]  ;;  %v831_v42 = vld [vmem:[#allocation3 + $0x8] sm:$0xff]  ;;  %v832_v7 = vld [vmem:[#allocation3 + $0x10] sm:$0xff] }
 0x439   :  { %2015 = vmatprep.mubr.msk.f32.mxu1 %vm536_vm2, %v830_v40  ;;  %v833_v48 = vld [vmem:[#allocation3 + $0x18] sm:$0xff]  ;;  %v834_v29 = vld [vmem:[#allocation3 + $0x20] sm:$0xff]  ;;  %v835_v31 = vld [vmem:[#allocation3 + $0x28] sm:$0xff] }
 0x43a   :  { %2016 = vmatmul.mubr.msk.f32.vlgmr.msra.gmra.mxu1 %vm536_vm2, %v831_v42  ;;  %v836_v33 = vld [vmem:[#allocation3 + $0x30] sm:$0xff]  ;;  %v837_v43 = vld [vmem:[#allocation3 + $0x38] sm:$0xff]  ;;  %v838_v45 = vld [vmem:[#allocation3 + $0x40] sm:$0xff] }
 0x43b   :  { %2018 = vmatprep.mubr.msk.f32.mxu1 %vm536_vm2, %v832_v7  ;;  %v839_v47 = vld [vmem:[#allocation3 + $0x48] sm:$0xff]  ;;  %v840_v51 = vld [vmem:[#allocation3 + $0x50] sm:$0xff]  ;;  %v841_v53 = vld [vmem:[#allocation3 + $0x58] sm:$0xff] }
 0x43c   :  { %v862_v39 = vld [vmem:[#allocation4] sm:$0xff]  ;;  %v863_v41 = vld [vmem:[#allocation4 + $0x8] sm:$0xff]  ;;  %v864_v6 = vld [vmem:[#allocation4 + $0x10] sm:$0xff] }
 0x43d   :  { %1959 = vmatprep.mubr.msk.f32.mxu0 %vm536_vm2, %v862_v39  ;;  %v865_v10 = vld [vmem:[#allocation4 + $0x18] sm:$0xff]  ;;  %v866_v28 = vld [vmem:[#allocation4 + $0x20] sm:$0xff]  ;;  %v867_v30 = vld [vmem:[#allocation4 + $0x28] sm:$0xff] }
 0x43e   :  { %1960 = vmatmul.mubr.msk.f32.vlgmr.msra.gmra.mxu0 %vm536_vm2, %v863_v41  ;;  %2019 = vmatmul.mubr.msk.f32.gmra.mxu1 %vm536_vm2, %v833_v48  ;;  %v868_v32 = vld [vmem:[#allocation4 + $0x30] sm:$0xff]  ;;  %v869_v34 = vld [vmem:[#allocation4 + $0x38] sm:$0xff]  ;;  %v870_v44 = vld [vmem:[#allocation4 + $0x40] sm:$0xff] }
 0x43f   :  { %1962 = vmatprep.mubr.msk.f32.mxu0 %vm536_vm2, %v864_v6  ;;  %2021 = vmatprep.mubr.msk.f32.mxu1 %vm536_vm2, %v834_v29  ;;  %v871_v46 = vld [vmem:[#allocation4 + $0x48] sm:$0xff]  ;;  %v872_v50 = vld [vmem:[#allocation4 + $0x50] sm:$0xff]  ;;  %v873_v52 = vld [vmem:[#allocation4 + $0x58] sm:$0xff] }
 0x440   :  { %v874_v54 = vld [vmem:[#allocation4 + $0x60] sm:$0xff]  ;;  %v875_v56 = vld [vmem:[#allocation4 + $0x68] sm:$0xff]  ;;  %v876_v58 = vld [vmem:[#allocation4 + $0x70] sm:$0xff] }
 0x441   :  { %v842_v55 = vld [vmem:[#allocation3 + $0x60] sm:$0xff]  ;;  %v843_v57 = vld [vmem:[#allocation3 + $0x68] sm:$0xff]  ;;  %v844_v59 = vld [vmem:[#allocation3 + $0x70] sm:$0xff] }
 0x442   :  { %1963 = vmatmul.mubr.msk.f32.gmra.mxu0 %vm536_vm2, %v865_v10  ;;  %2022 = vmatmul.mubr.msk.f32.gmra.mxu1 %vm536_vm2, %v835_v31  ;;  %v877_v60 = vld [vmem:[#allocation4 + $0x78] sm:$0xff]  ;;  %v878_v62 = vld [vmem:[#allocation4 + $0x80] sm:$0xff]  ;;  %v879_v0 = vld [vmem:[#allocation4 + $0x88] sm:$0xff] }
 0x443   :  { %1965 = vmatprep.mubr.msk.f32.mxu0 %vm536_vm2, %v866_v28  ;;  %2024 = vmatprep.mubr.msk.f32.mxu1 %vm536_vm2, %v836_v33  ;;  %v845_v61 = vld [vmem:[#allocation3 + $0x78] sm:$0xff]  ;;  %v846_v63 = vld [vmem:[#allocation3 + $0x80] sm:$0xff]  ;;  %v847_v1 = vld [vmem:[#allocation3 + $0x88] sm:$0xff] }
 0x444   :  { %v880_v2 = vld [vmem:[#allocation4 + $0x90] sm:$0xff]  ;;  %v881_v4 = vld [vmem:[#allocation4 + $0x98] sm:$0xff]  ;;  %v882_v8 = vld [vmem:[#allocation4 + $0xa0] sm:$0xff] }
 0x445   :  { %v848_v3 = vld [vmem:[#allocation3 + $0x90] sm:$0xff]  ;;  %v849_v5 = vld [vmem:[#allocation3 + $0x98] sm:$0xff]  ;;  %v850_v9 = vld [vmem:[#allocation3 + $0xa0] sm:$0xff] }
 0x446   :  { %1966 = vmatmul.mubr.msk.f32.gmra.mxu0 %vm536_vm2, %v867_v30  ;;  %2025 = vmatmul.mubr.msk.f32.gmra.mxu1 %vm536_vm2, %v837_v43  ;;  %v883_v11 = vld [vmem:[#allocation4 + $0xa8] sm:$0xff]  ;;  %v884_v49 = vld [vmem:[#allocation4 + $0xb0] sm:$0xff]  ;;  %v885_v14 = vld [vmem:[#allocation4 + $0xb8] sm:$0xff] }
 0x447   :  { %1968 = vmatprep.mubr.msk.f32.mxu0 %vm536_vm2, %v868_v32  ;;  %2027 = vmatprep.mubr.msk.f32.mxu1 %vm536_vm2, %v838_v45  ;;  %v851_v12 = vld [vmem:[#allocation3 + $0xa8] sm:$0xff]  ;;  %v852_v13 = vld [vmem:[#allocation3 + $0xb0] sm:$0xff]  ;;  %v853_v15 = vld [vmem:[#allocation3 + $0xb8] sm:$0xff] }
 0x448   :  { %v886_v16 = vld [vmem:[#allocation4 + $0xc0] sm:$0xff]  ;;  %v887_v18 = vld [vmem:[#allocation4 + $0xc8] sm:$0xff]  ;;  %v888_v20 = vld [vmem:[#allocation4 + $0xd0] sm:$0xff] }
 0x449   :  { %v854_v17 = vld [vmem:[#allocation3 + $0xc0] sm:$0xff]  ;;  %v855_v19 = vld [vmem:[#allocation3 + $0xc8] sm:$0xff]  ;;  %v856_v21 = vld [vmem:[#allocation3 + $0xd0] sm:$0xff] }
 0x44a   :  { %1969 = vmatmul.mubr.msk.f32.gmra.mxu0 %vm536_vm2, %v869_v34  ;;  %2028 = vmatmul.mubr.msk.f32.gmra.mxu1 %vm536_vm2, %v839_v47  ;;  %v889_v22 = vld [vmem:[#allocation4 + $0xd8] sm:$0xff]  ;;  %v890_v24 = vld [vmem:[#allocation4 + $0xe0] sm:$0xff]  ;;  %v891_v26 = vld [vmem:[#allocation4 + $0xe8] sm:$0xff] }
 0x44b   :  { %1971 = vmatprep.mubr.msk.f32.mxu0 %vm536_vm2, %v870_v44  ;;  %2030 = vmatprep.mubr.msk.f32.mxu1 %vm536_vm2, %v840_v51  ;;  %v857_v23 = vld [vmem:[#allocation3 + $0xd8] sm:$0xff]  ;;  %v858_v25 = vld [vmem:[#allocation3 + $0xe0] sm:$0xff]  ;;  %v859_v27 = vld [vmem:[#allocation3 + $0xe8] sm:$0xff] }
 0x44c   :  { %v892_v35 = vld [vmem:[#allocation4 + $0xf0] sm:$0xff]  ;;  %v893_v37 = vld [vmem:[#allocation4 + $0xf8] sm:$0xff]  ;;  %v2774_v41 = vld [vmem:[%s2976_s7] ss:$0 sm:$0xff] }
 0x44d   :  { %v860_v36 = vld [vmem:[#allocation3 + $0xf0] sm:$0xff]  ;;  %v861_v38 = vld [vmem:[#allocation3 + $0xf8] sm:$0xff]  ;;  %v2779_v6 = vld [vmem:[%s2977_s8] ss:$0 sm:$0xff] }
 0x44e   :  { %1972 = vmatmul.mubr.msk.f32.gmra.mxu0 %vm536_vm2, %v871_v46  ;;  %2031 = vmatmul.mubr.msk.f32.gmra.mxu1 %vm536_vm2, %v841_v53 }
 0x44f   :  { %1974 = vmatprep.mubr.msk.f32.mxu0 %vm536_vm2, %v872_v50  ;;  %2033 = vmatprep.mubr.msk.f32.mxu1 %vm536_vm2, %v842_v55 }
 0x452   :  { %1975 = vmatmul.mubr.msk.f32.gmra.mxu0 %vm536_vm2, %v873_v52  ;;  %2034 = vmatmul.mubr.msk.f32.gmra.mxu1 %vm536_vm2, %v843_v57 }
 0x453   :  { %1977 = vmatprep.mubr.msk.f32.mxu0 %vm536_vm2, %v874_v54  ;;  %2036 = vmatprep.mubr.msk.f32.mxu1 %vm536_vm2, %v844_v59 }
 0x456   :  { %1978 = vmatmul.mubr.msk.f32.gmra.mxu0 %vm536_vm2, %v875_v56  ;;  %2037 = vmatmul.mubr.msk.f32.gmra.mxu1 %vm536_vm2, %v845_v61 }
 0x457   :  { %1980 = vmatprep.mubr.msk.f32.mxu0 %vm536_vm2, %v876_v58  ;;  %2039 = vmatprep.mubr.msk.f32.mxu1 %vm536_vm2, %v846_v63 }
 0x45a   :  { %1981 = vmatmul.mubr.msk.f32.gmra.mxu0 %vm536_vm2, %v877_v60  ;;  %2040 = vmatmul.mubr.msk.f32.gmra.mxu1 %vm536_vm2, %v847_v1 }
 0x45b   :  { %1983 = vmatprep.mubr.msk.f32.mxu0 %vm536_vm2, %v878_v62  ;;  %2042 = vmatprep.mubr.msk.f32.mxu1 %vm536_vm2, %v848_v3 }
 0x45e   :  { %1984 = vmatmul.mubr.msk.f32.gmra.mxu0 %vm536_vm2, %v879_v0  ;;  %2043 = vmatmul.mubr.msk.f32.gmra.mxu1 %vm536_vm2, %v849_v5 }
 0x45f   :  { %1986 = vmatprep.mubr.msk.f32.mxu0 %vm536_vm2, %v880_v2  ;;  %2045 = vmatprep.mubr.msk.f32.mxu1 %vm536_vm2, %v850_v9 }
 0x462   :  { %1987 = vmatmul.mubr.msk.f32.gmra.mxu0 %vm536_vm2, %v881_v4  ;;  %2046 = vmatmul.mubr.msk.f32.gmra.mxu1 %vm536_vm2, %v851_v12 }
 0x463   :  { %1989 = vmatprep.mubr.msk.f32.mxu0 %vm536_vm2, %v882_v8  ;;  %2048 = vmatprep.mubr.msk.f32.mxu1 %vm536_vm2, %v852_v13 }
 0x466   :  { %1990 = vmatmul.mubr.msk.f32.gmra.mxu0 %vm536_vm2, %v883_v11  ;;  %2049 = vmatmul.mubr.msk.f32.gmra.mxu1 %vm536_vm2, %v853_v15 }
 0x467   :  { %1992 = vmatprep.mubr.msk.f32.mxu0 %vm536_vm2, %v884_v49  ;;  %2051 = vmatprep.mubr.msk.f32.mxu1 %vm536_vm2, %v854_v17 }
 0x46a   :  { %1993 = vmatmul.mubr.msk.f32.gmra.mxu0 %vm536_vm2, %v885_v14  ;;  %2052 = vmatmul.mubr.msk.f32.gmra.mxu1 %vm536_vm2, %v855_v19 }
 0x46b   :  { %1995 = vmatprep.mubr.msk.f32.mxu0 %vm536_vm2, %v886_v16  ;;  %2054 = vmatprep.mubr.msk.f32.mxu1 %vm536_vm2, %v856_v21 }
 0x46e   :  { %1996 = vmatmul.mubr.msk.f32.gmra.mxu0 %vm536_vm2, %v887_v18  ;;  %2055 = vmatmul.mubr.msk.f32.gmra.mxu1 %vm536_vm2, %v857_v23 }
 0x46f   :  { %1998 = vmatprep.mubr.msk.f32.mxu0 %vm536_vm2, %v888_v20  ;;  %2057 = vmatprep.mubr.msk.f32.mxu1 %vm536_vm2, %v858_v25 }
 0x472   :  { %1999 = vmatmul.mubr.msk.f32.gmra.mxu0 %vm536_vm2, %v889_v22  ;;  %2058 = vmatmul.mubr.msk.f32.gmra.mxu1 %vm536_vm2, %v859_v27 }
 0x473   :  { %2001 = vmatprep.mubr.msk.f32.mxu0 %vm536_vm2, %v890_v24  ;;  %2060 = vmatprep.mubr.msk.f32.mxu1 %vm536_vm2, %v860_v36 }
 0x476   :  { %2002 = vmatmul.mubr.msk.f32.gmra.mxu0 %vm536_vm2, %v891_v26  ;;  %2061 = vmatmul.mubr.msk.f32.gmra.mxu1 %vm536_vm2, %v861_v38 }
 0x477   :  { %2004 = vmatprep.mubr.msk.f32.mxu0 %vm536_vm2, %v892_v35 }
 0x47a   :  { %2005 = vmatmul.mubr.msk.f32.gmra.mxu0 %vm536_vm2, %v893_v37 }
 0x4fa   :  { %v2017_v40 = vpop.f32.mrf.mxu1 }
 0x4fc   :  { %v1386_v10 = vpop.f32.mrf.mxu1 }
 0x4fe   :  { %v1961_v39 = vpop.f32.mrf.mxu0  ;;  %v2020_v30 = vpop.f32.mrf.mxu1 }
 0x4ff   :  { %v1392_v42 = vadd.f32 %v2017_v40, %v1961_v39 }
 0x500   :  { %v1065_v7 = vpop.f32.mrf.mxu0  ;;  %v1396_v43 = vpop.f32.mrf.mxu1 }
 0x501   :  { %v1553_v48 = vmul.f32 %v2774_v41, %v1392_v42  ;;  %v1387_v28 = vadd.f32 %v1386_v10, %v1065_v7 }
 0x502   :  { %v1964_v29 = vpop.f32.mrf.mxu0  ;;  %v2023_v51 = vpop.f32.mrf.mxu1 }
 0x503   :  { %v1592_v31 = vadd.f32 %v2779_v6, %v1553_v48  ;;  %v1552_v32 = vmul.f32 %v2774_v41, %v1387_v28  ;;  %v1402_v33 = vadd.f32 %v2020_v30, %v1964_v29 }
 0x504   :  { %v1075_v34 = vpop.f32.mrf.mxu0  ;;  %v1406_v57 = vpop.f32.mrf.mxu1 }
 0x505   :  { %v1624_v44 = vmax.f32 %v1592_v31, 0.0  ;;  %v1591_v45 = vadd.f32 %v2779_v6, %v1552_v32  ;;  %v1555_v46 = vmul.f32 %v2774_v41, %v1402_v33  ;;  %v1397_v47 = vadd.f32 %v1396_v43, %v1075_v34 }
 0x506   :  { %v1967_v50 = vpop.f32.mrf.mxu0  ;;  %v2026_v63 = vpop.f32.mrf.mxu1 }
 0x507   :  { %1657 = vst.msk [vmem:[%s2978_s9 + $0x8] sm:$0xff] %vm1655_vm3, %v1624_v44  ;;  %v1623_v52 = vmax.f32 %v1591_v45, 0.0  ;;  %v1594_v53 = vadd.f32 %v2779_v6, %v1555_v46  ;;  %v1554_v54 = vmul.f32 %v2774_v41, %v1397_v47  ;;  %v1412_v55 = vadd.f32 %v2023_v51, %v1967_v50 }
 0x508   :  { %v1085_v56 = vpop.f32.mrf.mxu0  ;;  %v1416_v5 = vpop.f32.mrf.mxu1 }
 0x509   :  { %1656 = vst.msk [vmem:[%s2978_s9] sm:$0xff] %vm1655_vm3, %v1623_v52  ;;  %v1626_v58 = vmax.f32 %v1594_v53, 0.0  ;;  %v1593_v59 = vadd.f32 %v2779_v6, %v1554_v54  ;;  %v1557_v60 = vmul.f32 %v2774_v41, %v1412_v55  ;;  %v1407_v61 = vadd.f32 %v1406_v57, %v1085_v56 }
 0x50a   :  { %v1970_v62 = vpop.f32.mrf.mxu0  ;;  %v2029_v13 = vpop.f32.mrf.mxu1 }
 0x50b   :  { %1659 = vst.msk [vmem:[%s2978_s9 + $0x18] sm:$0xff] %vm1655_vm3, %v1626_v58  ;;  %v1625_v0 = vmax.f32 %v1593_v59, 0.0  ;;  %v1596_v1 = vadd.f32 %v2779_v6, %v1557_v60  ;;  %v1556_v2 = vmul.f32 %v2774_v41, %v1407_v61  ;;  %v1422_v3 = vadd.f32 %v2026_v63, %v1970_v62 }
 0x50c   :  { %v1095_v4 = vpop.f32.mrf.mxu0  ;;  %v1426_v19 = vpop.f32.mrf.mxu1 }
 0x50d   :  { %1658 = vst.msk [vmem:[%s2978_s9 + $0x10] sm:$0xff] %vm1655_vm3, %v1625_v0  ;;  %v1628_v8 = vmax.f32 %v1596_v1, 0.0  ;;  %v1595_v9 = vadd.f32 %v2779_v6, %v1556_v2  ;;  %v1559_v11 = vmul.f32 %v2774_v41, %v1422_v3  ;;  %v1417_v12 = vadd.f32 %v1416_v5, %v1095_v4 }
 0x50e   :  { %v1973_v49 = vpop.f32.mrf.mxu0  ;;  %v2032_v25 = vpop.f32.mrf.mxu1 }
 0x50f   :  { %1661 = vst.msk [vmem:[%s2978_s9 + $0x28] sm:$0xff] %vm1655_vm3, %v1628_v8  ;;  %v1627_v14 = vmax.f32 %v1595_v9, 0.0  ;;  %v1598_v15 = vadd.f32 %v2779_v6, %v1559_v11  ;;  %v1558_v16 = vmul.f32 %v2774_v41, %v1417_v12  ;;  %v1432_v17 = vadd.f32 %v2029_v13, %v1973_v49 }
 0x510   :  { %v1105_v18 = vpop.f32.mrf.mxu0  ;;  %v1436_v38 = vpop.f32.mrf.mxu1 }
 0x511   :  { %1660 = vst.msk [vmem:[%s2978_s9 + $0x20] sm:$0xff] %vm1655_vm3, %v1627_v14  ;;  %v1630_v20 = vmax.f32 %v1598_v15, 0.0  ;;  %v1597_v21 = vadd.f32 %v2779_v6, %v1558_v16  ;;  %v1561_v22 = vmul.f32 %v2774_v41, %v1432_v17  ;;  %v1427_v23 = vadd.f32 %v1426_v19, %v1105_v18 }
 0x512   :  { %v1976_v24 = vpop.f32.mrf.mxu0  ;;  %v2035_v48 = vpop.f32.mrf.mxu1 }
 0x513   :  { %1663 = vst.msk [vmem:[%s2978_s9 + $0x38] sm:$0xff] %vm1655_vm3, %v1630_v20  ;;  %v1629_v26 = vmax.f32 %v1597_v21, 0.0  ;;  %v1600_v27 = vadd.f32 %v2779_v6, %v1561_v22  ;;  %v1560_v35 = vmul.f32 %v2774_v41, %v1427_v23  ;;  %v1442_v36 = vadd.f32 %v2032_v25, %v1976_v24 }
 0x514   :  { %v1115_v37 = vpop.f32.mrf.mxu0  ;;  %v1446_v33 = vpop.f32.mrf.mxu1 }
 0x515   :  { %1662 = vst.msk [vmem:[%s2978_s9 + $0x30] sm:$0xff] %vm1655_vm3, %v1629_v26  ;;  %v1632_v39 = vmax.f32 %v1600_v27, 0.0  ;;  %v1599_v40 = vadd.f32 %v2779_v6, %v1560_v35  ;;  %v1563_v42 = vmul.f32 %v2774_v41, %v1442_v36  ;;  %v1437_v7 = vadd.f32 %v1436_v38, %v1115_v37 }
 0x516   :  { %v1979_v10 = vpop.f32.mrf.mxu0  ;;  %v2038_v47 = vpop.f32.mrf.mxu1 }
 0x517   :  { %1665 = vst.msk [vmem:[%s2978_s9 + $0x48] sm:$0xff] %vm1655_vm3, %v1632_v39  ;;  %v1631_v28 = vmax.f32 %v1599_v40, 0.0  ;;  %v1602_v29 = vadd.f32 %v2779_v6, %v1563_v42  ;;  %v1562_v30 = vmul.f32 %v2774_v41, %v1437_v7  ;;  %v1452_v31 = vadd.f32 %v2035_v48, %v1979_v10 }
 0x518   :  { %v1125_v32 = vpop.f32.mrf.mxu0  ;;  %v1456_v55 = vpop.f32.mrf.mxu1 }
 0x519   :  { %1664 = vst.msk [vmem:[%s2978_s9 + $0x40] sm:$0xff] %vm1655_vm3, %v1631_v28  ;;  %v1634_v34 = vmax.f32 %v1602_v29, 0.0  ;;  %v1601_v43 = vadd.f32 %v2779_v6, %v1562_v30  ;;  %v1565_v44 = vmul.f32 %v2774_v41, %v1452_v31  ;;  %v1447_v45 = vadd.f32 %v1446_v33, %v1125_v32 }
 0x51a   :  { %v1982_v46 = vpop.f32.mrf.mxu0  ;;  %v2041_v61 = vpop.f32.mrf.mxu1 }
 0x51b   :  { %1667 = vst.msk [vmem:[%s2978_s9 + $0x58] sm:$0xff] %vm1655_vm3, %v1634_v34  ;;  %v1633_v50 = vmax.f32 %v1601_v43, 0.0  ;;  %v1604_v51 = vadd.f32 %v2779_v6, %v1565_v44  ;;  %v1564_v52 = vmul.f32 %v2774_v41, %v1447_v45  ;;  %v1462_v53 = vadd.f32 %v2038_v47, %v1982_v46 }
 0x51c   :  { %v1135_v54 = vpop.f32.mrf.mxu0  ;;  %v1466_v3 = vpop.f32.mrf.mxu1 }
 0x51d   :  { %1666 = vst.msk [vmem:[%s2978_s9 + $0x50] sm:$0xff] %vm1655_vm3, %v1633_v50  ;;  %v1636_v56 = vmax.f32 %v1604_v51, 0.0  ;;  %v1603_v57 = vadd.f32 %v2779_v6, %v1564_v52  ;;  %v1567_v58 = vmul.f32 %v2774_v41, %v1462_v53  ;;  %v1457_v59 = vadd.f32 %v1456_v55, %v1135_v54 }
 0x51e   :  { %v1985_v60 = vpop.f32.mrf.mxu0  ;;  %v2044_v12 = vpop.f32.mrf.mxu1 }
 0x51f   :  { %1669 = vst.msk [vmem:[%s2978_s9 + $0x68] sm:$0xff] %vm1655_vm3, %v1636_v56  ;;  %v1635_v62 = vmax.f32 %v1603_v57, 0.0  ;;  %v1606_v63 = vadd.f32 %v2779_v6, %v1567_v58  ;;  %v1566_v0 = vmul.f32 %v2774_v41, %v1457_v59  ;;  %v1472_v1 = vadd.f32 %v2041_v61, %v1985_v60 }
 0x520   :  { %v1145_v2 = vpop.f32.mrf.mxu0  ;;  %v1476_v17 = vpop.f32.mrf.mxu1 }
 0x521   :  { %1668 = vst.msk [vmem:[%s2978_s9 + $0x60] sm:$0xff] %vm1655_vm3, %v1635_v62  ;;  %v1638_v4 = vmax.f32 %v1606_v63, 0.0  ;;  %v1605_v5 = vadd.f32 %v2779_v6, %v1566_v0  ;;  %v1569_v8 = vmul.f32 %v2774_v41, %v1472_v1  ;;  %v1467_v9 = vadd.f32 %v1466_v3, %v1145_v2 }
 0x522   :  { %v1988_v11 = vpop.f32.mrf.mxu0  ;;  %v2047_v23 = vpop.f32.mrf.mxu1 }
 0x523   :  { %1671 = vst.msk [vmem:[%s2978_s9 + $0x78] sm:$0xff] %vm1655_vm3, %v1638_v4  ;;  %v1637_v49 = vmax.f32 %v1605_v5, 0.0  ;;  %v1608_v13 = vadd.f32 %v2779_v6, %v1569_v8  ;;  %v1568_v14 = vmul.f32 %v2774_v41, %v1467_v9  ;;  %v1482_v15 = vadd.f32 %v2044_v12, %v1988_v11 }
 0x524   :  { %v1155_v16 = vpop.f32.mrf.mxu0  ;;  %v1486_v36 = vpop.f32.mrf.mxu1 }
 0x525   :  { %1670 = vst.msk [vmem:[%s2978_s9 + $0x70] sm:$0xff] %vm1655_vm3, %v1637_v49  ;;  %v1640_v18 = vmax.f32 %v1608_v13, 0.0  ;;  %v1607_v19 = vadd.f32 %v2779_v6, %v1568_v14  ;;  %v1571_v20 = vmul.f32 %v2774_v41, %v1482_v15  ;;  %v1477_v21 = vadd.f32 %v1476_v17, %v1155_v16 }
 0x526   :  { %v1991_v22 = vpop.f32.mrf.mxu0  ;;  %v2050_v7 = vpop.f32.mrf.mxu1 }
 0x527   :  { %1673 = vst.msk [vmem:[%s2978_s9 + $0x88] sm:$0xff] %vm1655_vm3, %v1640_v18  ;;  %v1639_v24 = vmax.f32 %v1607_v19, 0.0  ;;  %v1610_v25 = vadd.f32 %v2779_v6, %v1571_v20  ;;  %v1570_v26 = vmul.f32 %v2774_v41, %v1477_v21  ;;  %v1492_v27 = vadd.f32 %v2047_v23, %v1991_v22 }
 0x528   :  { %v1165_v35 = vpop.f32.mrf.mxu0  ;;  %v1496_v31 = vpop.f32.mrf.mxu1 }
 0x529   :  { %1672 = vst.msk [vmem:[%s2978_s9 + $0x80] sm:$0xff] %vm1655_vm3, %v1639_v24  ;;  %v1642_v37 = vmax.f32 %v1610_v25, 0.0  ;;  %v1609_v38 = vadd.f32 %v2779_v6, %v1570_v26  ;;  %v1573_v39 = vmul.f32 %v2774_v41, %v1492_v27  ;;  %v1487_v40 = vadd.f32 %v1486_v36, %v1165_v35 }
 0x52a   :  { %v1994_v42 = vpop.f32.mrf.mxu0  ;;  %v2053_v45 = vpop.f32.mrf.mxu1 }
 0x52b   :  { %1675 = vst.msk [vmem:[%s2978_s9 + $0x98] sm:$0xff] %vm1655_vm3, %v1642_v37  ;;  %v1641_v10 = vmax.f32 %v1609_v38, 0.0  ;;  %v1612_v48 = vadd.f32 %v2779_v6, %v1573_v39  ;;  %v1572_v28 = vmul.f32 %v2774_v41, %v1487_v40  ;;  %v1502_v29 = vadd.f32 %v2050_v7, %v1994_v42 }
 0x52c   :  { %v1175_v30 = vpop.f32.mrf.mxu0  ;;  %v1506_v53 = vpop.f32.mrf.mxu1 }
 0x52d   :  { %1674 = vst.msk [vmem:[%s2978_s9 + $0x90] sm:$0xff] %vm1655_vm3, %v1641_v10  ;;  %v1644_v32 = vmax.f32 %v1612_v48, 0.0  ;;  %v1611_v33 = vadd.f32 %v2779_v6, %v1572_v28  ;;  %v1575_v34 = vmul.f32 %v2774_v41, %v1502_v29  ;;  %v1497_v43 = vadd.f32 %v1496_v31, %v1175_v30 }
 0x52e   :  { %v1997_v44 = vpop.f32.mrf.mxu0  ;;  %v2056_v59 = vpop.f32.mrf.mxu1 }
 0x52f   :  { %1677 = vst.msk [vmem:[%s2978_s9 + $0xa8] sm:$0xff] %vm1655_vm3, %v1644_v32  ;;  %v1643_v46 = vmax.f32 %v1611_v33, 0.0  ;;  %v1614_v47 = vadd.f32 %v2779_v6, %v1575_v34  ;;  %v1574_v50 = vmul.f32 %v2774_v41, %v1497_v43  ;;  %v1512_v51 = vadd.f32 %v2053_v45, %v1997_v44 }
 0x530   :  { %v1185_v52 = vpop.f32.mrf.mxu0  ;;  %v1516_v1 = vpop.f32.mrf.mxu1 }
 0x531   :  { %1676 = vst.msk [vmem:[%s2978_s9 + $0xa0] sm:$0xff] %vm1655_vm3, %v1643_v46  ;;  %v1646_v54 = vmax.f32 %v1614_v47, 0.0  ;;  %v1613_v55 = vadd.f32 %v2779_v6, %v1574_v50  ;;  %v1577_v56 = vmul.f32 %v2774_v41, %v1512_v51  ;;  %v1507_v57 = vadd.f32 %v1506_v53, %v1185_v52 }
 0x532   :  { %v2000_v58 = vpop.f32.mrf.mxu0  ;;  %v2059_v9 = vpop.f32.mrf.mxu1 }
 0x533   :  { %1679 = vst.msk [vmem:[%s2978_s9 + $0xb8] sm:$0xff] %vm1655_vm3, %v1646_v54  ;;  %v1645_v60 = vmax.f32 %v1613_v55, 0.0  ;;  %v1616_v61 = vadd.f32 %v2779_v6, %v1577_v56  ;;  %v1576_v62 = vmul.f32 %v2774_v41, %v1507_v57  ;;  %v1522_v63 = vadd.f32 %v2056_v59, %v2000_v58 }
 0x534   :  { %v1195_v0 = vpop.f32.mrf.mxu0  ;;  %v1526_v15 = vpop.f32.mrf.mxu1 }
 0x535   :  { %1678 = vst.msk [vmem:[%s2978_s9 + $0xb0] sm:$0xff] %vm1655_vm3, %v1645_v60  ;;  %v1648_v2 = vmax.f32 %v1616_v61, 0.0  ;;  %v1615_v3 = vadd.f32 %v2779_v6, %v1576_v62  ;;  %v1579_v4 = vmul.f32 %v2774_v41, %v1522_v63  ;;  %v1517_v5 = vadd.f32 %v1516_v1, %v1195_v0 }
 0x536   :  { %v2003_v8 = vpop.f32.mrf.mxu0  ;;  %v2062_v21 = vpop.f32.mrf.mxu1 }
 0x537   :  { %1681 = vst.msk [vmem:[%s2978_s9 + $0xc8] sm:$0xff] %vm1655_vm3, %v1648_v2  ;;  %v1647_v11 = vmax.f32 %v1615_v3, 0.0  ;;  %v1618_v12 = vadd.f32 %v2779_v6, %v1579_v4  ;;  %v1578_v49 = vmul.f32 %v2774_v41, %v1517_v5  ;;  %v1532_v13 = vadd.f32 %v2059_v9, %v2003_v8 }
 0x538   :  { %v1205_v14 = vpop.f32.mrf.mxu0  ;;  %v1536_v27 = vpop.f32.mrf.mxu1 }
 0x539   :  { %1680 = vst.msk [vmem:[%s2978_s9 + $0xc0] sm:$0xff] %vm1655_vm3, %v1647_v11  ;;  %v1650_v16 = vmax.f32 %v1618_v12, 0.0  ;;  %v1617_v17 = vadd.f32 %v2779_v6, %v1578_v49  ;;  %v1581_v18 = vmul.f32 %v2774_v41, %v1532_v13  ;;  %v1527_v19 = vadd.f32 %v1526_v15, %v1205_v14 }
 0x53a   :  { %v2006_v20 = vpop.f32.mrf.mxu0 }
 0x53b   :  { %1683 = vst.msk [vmem:[%s2978_s9 + $0xd8] sm:$0xff] %vm1655_vm3, %v1650_v16  ;;  %v1649_v22 = vmax.f32 %v1617_v17, 0.0  ;;  %v1620_v23 = vadd.f32 %v2779_v6, %v1581_v18  ;;  %v1580_v24 = vmul.f32 %v2774_v41, %v1527_v19  ;;  %v1542_v25 = vadd.f32 %v2062_v21, %v2006_v20 }
 0x53c   :  { %v1215_v26 = vpop.f32.mrf.mxu0 }
 0x53d   :  { %1682 = vst.msk [vmem:[%s2978_s9 + $0xd0] sm:$0xff] %vm1655_vm3, %v1649_v22  ;;  %v1652_v35 = vmax.f32 %v1620_v23, 0.0  ;;  %v1619_v36 = vadd.f32 %v2779_v6, %v1580_v24  ;;  %v1583_v37 = vmul.f32 %v2774_v41, %v1542_v25  ;;  %v1537_v38 = vadd.f32 %v1536_v27, %v1215_v26 }
 0x53f   :  { %1685 = vst.msk [vmem:[%s2978_s9 + $0xe8] sm:$0xff] %vm1655_vm3, %v1652_v35  ;;  %v1651_v39 = vmax.f32 %v1619_v36, 0.0  ;;  %v1622_v40 = vadd.f32 %v2779_v6, %v1583_v37  ;;  %v1582_v42 = vmul.f32 %v2774_v41, %v1537_v38 }
 0x541   :  { %1684 = vst.msk [vmem:[%s2978_s9 + $0xe0] sm:$0xff] %vm1655_vm3, %v1651_v39  ;;  %v1654_v7 = vmax.f32 %v1622_v40, 0.0  ;;  %v1621_v10 = vadd.f32 %v2779_v6, %v1582_v42 }
 0x543   :  { %1687 = vst.msk [vmem:[%s2978_s9 + $0xf8] sm:$0xff] %vm1655_vm3, %v1654_v7  ;;  %v1653_v48 = vmax.f32 %v1621_v10, 0.0 }
 0x545   :  { %1686 = vst.msk [vmem:[%s2978_s9 + $0xf0] sm:$0xff] %vm1655_vm3, %v1653_v48 }

</bundles_post_ra>
